<compile_context>
chip_gen: v5e
topology: v5e:2x2
jax: 0.10.0
libtpu: 0.0.40
codegen_flags: <defaults>
</compile_context>

<pallas_src>
import jax
import jax.numpy as jnp
from jax.experimental import pallas as pl
from jax.experimental.pallas import tpu as pltpu

# fc1..fc6 dimensions from the PyTorch module.
LAYER_DIMS = [(28 * 28, 256), (256, 128), (128, 64), (64, 32), (32, 16), (16, 10)]
LANE = 128
K1 = 28 * 28          # 784 (kept unpadded; Mosaic handles K=784 natively)
OUT_PAD = 128         # lane-dense output width (logits live in [:, :10])


def _round_up(n, m):
    return (n + m - 1) // m * m


def _cdiv(a, b):
    return (a + b - 1) // b


def mlp_kernel(x_ref,
               w1_ref, b1_ref, w2_ref, b2_ref, w3_ref, b3_ref,
               w4_ref, b4_ref, w5_ref, b5_ref, w6_ref, b6_ref,
               o_ref):
    """Fused 6-layer MLP on one (TB, 784) batch tile.

    MXU operands are in `compute_dtype` (bf16 default or f32); accumulation,
    bias add and ReLU run in f32.  Hidden widths are zero-padded to multiples
    of 128, so padded lanes contribute exactly zero through every layer.
    """
    compute_dtype = w1_ref.dtype
    h = x_ref[...]                          # (TB, 784), already in compute_dtype

    def layer(h, w_ref, b_ref, relu):
        acc = jnp.dot(h, w_ref[...], preferred_element_type=jnp.float32)
        acc = acc + b_ref[...]              # f32 bias, broadcasts over rows
        if relu:
            acc = jnp.maximum(acc, 0.0)     # ReLU in f32
        return acc

    h = layer(h, w1_ref, b1_ref, True).astype(compute_dtype)
    h = layer(h, w2_ref, b2_ref, True).astype(compute_dtype)
    h = layer(h, w3_ref, b3_ref, True).astype(compute_dtype)
    h = layer(h, w4_ref, b4_ref, True).astype(compute_dtype)
    h = layer(h, w5_ref, b5_ref, True).astype(compute_dtype)
    h = layer(h, w6_ref, b6_ref, False)     # final linear layer, f32

    o_ref[...] = h.astype(o_ref.dtype)      # lane-dense (TB, 128) store


def init_params(key):
    """Deterministic PyTorch-style init: U(-1/sqrt(fan_in), 1/sqrt(fan_in))."""
    params = []
    for (fan_in, fan_out) in LAYER_DIMS:
        key, kw, kb = jax.random.split(key, 3)
        bound = 1.0 / (fan_in ** 0.5)
        # stored as (in, out)  ==  PyTorch weight (out, in) transposed
        w = jax.random.uniform(kw, (fan_in, fan_out), jnp.float32, -bound, bound)
        b = jax.random.uniform(kb, (1, fan_out), jnp.float32, -bound, bound)
        params.append((w, b))
    return params


def _pad_params(params, compute_dtype):
    """Zero-pad layers to lane-aligned widths.

    Layer 1 keeps its K=784 contraction dim (x is fed unpadded); all other
    in/out widths are padded to multiples of 128.
    """
    padded = []
    for li, (w, b) in enumerate(params):
        fan_in, fan_out = w.shape
        in_p = fan_in if li == 0 else _round_up(fan_in, LANE)
        out_p = _round_up(fan_out, LANE)
        wp = jnp.pad(w, ((0, in_p - fan_in), (0, out_p - fan_out)))
        bp = jnp.pad(b.reshape(1, -1), ((0, 0), (0, out_p - fan_out)))
        padded.append((wp.astype(compute_dtype), bp.astype(jnp.float32)))
    return padded


def mlp_forward(x, params, *, compute_dtype=jnp.bfloat16,
                out_dtype=jnp.float32, tb_max=1024):
    """x: anything that flattens to (-1, 784); returns (B, 10) logits.

    compute_dtype: bf16 (default) halves x/weight HBM traffic and uses the
      native MXU path with f32 accumulation; float32 matches the PyTorch
      module's arithmetic exactly.
    out_dtype: set to jnp.bfloat16 to halve the (TB, 128) logit write stream
      if downstream tolerates it.
    tb_max: batch-tile rows.  1024 is near the HBM roofline and fits the
      32 MiB default scoped VMEM everywhere.  v5e/v6e (128 MiB VMEM) can use
      2048; on v7x (64 MiB VMEM) keep <=2048 for f32 / <=4096 for bf16.
    """
    x2d = x.reshape(-1, K1)
    B = x2d.shape[0]

    # Sublane granularity: 8 rows for 32-bit operands, 16 for bf16 (packed).
    sub = 8 if jnp.dtype(compute_dtype).itemsize == 4 else 16

    # Batch tile: sized so the grid always has >= 2 steps (both v7x cores get
    # work), capped at tb_max.
    tb = min(_round_up(tb_max, sub), _round_up(max(_cdiv(B, 2), 1), sub))
    grid_n = max(2, _cdiv(B, tb))
    b_pad = grid_n * tb

    # Single fused pad(batch)+cast pass on x; no K padding, no 896 inflation.
    if b_pad != B or x2d.dtype != jnp.dtype(compute_dtype):
        x2d = jnp.pad(x2d, ((0, b_pad - B), (0, 0))).astype(compute_dtype)

    padded = _pad_params(params, compute_dtype)

    flat_params = []
    # x tile marches along the batch grid axis; last dim == full array dim.
    in_specs = [pl.BlockSpec((tb, K1), lambda i: (i, 0))]
    # Weights/biases: constant index_map -> fetched once, VMEM-resident.
    for w, b in padded:
        flat_params.extend([w, b])
        in_specs.append(pl.BlockSpec(w.shape, lambda i: (0, 0)))
        in_specs.append(pl.BlockSpec(b.shape, lambda i: (0, 0)))

    flops = 2 * b_pad * sum(int(w.shape[0]) * int(w.shape[1]) for w, _ in padded)
    bytes_accessed = int(
        x2d.size * x2d.dtype.itemsize
        + sum(w.size * w.dtype.itemsize + b.size * b.dtype.itemsize
              for w, b in padded)
        + b_pad * OUT_PAD * jnp.dtype(out_dtype).itemsize)

    out = pl.pallas_call(
        mlp_kernel,
        out_shape=jax.ShapeDtypeStruct((b_pad, OUT_PAD), out_dtype),
        grid=(grid_n,),
        in_specs=in_specs,
        out_specs=pl.BlockSpec((tb, OUT_PAD), lambda i: (i, 0)),
        compiler_params=pltpu.CompilerParams(
            dimension_semantics=("parallel",)),
        cost_estimate=pl.CostEstimate(
            flops=flops, transcendentals=0, bytes_accessed=bytes_accessed),
    )(x2d, *flat_params)

    # Drop batch padding and the zero-padded logit lanes.
    return out[:B, :10]


def mlp_reference(x, params, compute_dtype=jnp.float32):
    """Pure-JAX reference mirroring the kernel's operand dtype / f32 accumulate."""
    h = x.reshape(-1, K1).astype(jnp.float32)
    for i, (w, b) in enumerate(params):
        h = jnp.dot(h.astype(compute_dtype), w.astype(compute_dtype),
                    preferred_element_type=jnp.float32) + b.reshape(1, -1)
        if i < len(params) - 1:
            h = jnp.maximum(h, 0.0)
    return h


if __name__ == "__main__":
    key = jax.random.PRNGKey(0)
    key, kx = jax.random.split(key)

    # Small MNIST-like batch: (batch=2, 1, 28, 28) -> flattened to (2, 784).
    x = jax.random.normal(kx, (2, 1, 28, 28), jnp.float32)
    params = init_params(key)

    # Default path: bf16 MXU operands, f32 accumulate / bias / ReLU / output.
    out_bf16 = jax.block_until_ready(mlp_forward(x, params))
    ref_bf16 = mlp_reference(x, params, compute_dtype=jnp.bfloat16)
    assert out_bf16.shape == (2, 10)
    assert jnp.allclose(out_bf16, ref_bf16, atol=5e-2, rtol=5e-2)

    # f32 path: matches the PyTorch module's forward arithmetic.
    out_f32 = jax.block_until_ready(
        mlp_forward(x, params, compute_dtype=jnp.float32))
    ref_f32 = mlp_reference(x, params, compute_dtype=jnp.float32)
    assert out_f32.shape == (2, 10)
    assert jnp.allclose(out_f32, ref_f32, atol=1e-3, rtol=1e-3)

    print("KERNEL_OK")
</pallas_src>

<mosaic_0001>
module attributes {stable_mosaic.version = 11 : i64} {
  func.func @mlp_kernel(%arg0: i32, %arg1: memref<16x784xbf16, #tpu.memory_space<vmem>>, %arg2: memref<784x256xbf16, #tpu.memory_space<vmem>>, %arg3: memref<1x256xf32, #tpu.memory_space<vmem>>, %arg4: memref<256x128xbf16, #tpu.memory_space<vmem>>, %arg5: memref<1x128xf32, #tpu.memory_space<vmem>>, %arg6: memref<128x128xbf16, #tpu.memory_space<vmem>>, %arg7: memref<1x128xf32, #tpu.memory_space<vmem>>, %arg8: memref<128x128xbf16, #tpu.memory_space<vmem>>, %arg9: memref<1x128xf32, #tpu.memory_space<vmem>>, %arg10: memref<128x128xbf16, #tpu.memory_space<vmem>>, %arg11: memref<1x128xf32, #tpu.memory_space<vmem>>, %arg12: memref<128x128xbf16, #tpu.memory_space<vmem>>, %arg13: memref<1x128xf32, #tpu.memory_space<vmem>>, %arg14: memref<16x128xf32, #tpu.memory_space<vmem>>) attributes {dimension_semantics = [#tpu.dimension_semantics<parallel>], iteration_bounds = array<i64: 2>, scalar_prefetch = 0 : i64, scratch_operands = 0 : i64, tpu.core_type = #tpu.core_type<tc>, window_params = [{transform_indices = @transform_0, window_bounds = array<i64: 16, 784>}, {pipeline_mode = #tpu.pipeline_mode<synchronous>, transform_indices = @transform_1, window_bounds = array<i64: 784, 256>}, {pipeline_mode = #tpu.pipeline_mode<synchronous>, transform_indices = @transform_2, window_bounds = array<i64: 1, 256>}, {pipeline_mode = #tpu.pipeline_mode<synchronous>, transform_indices = @transform_3, window_bounds = array<i64: 256, 128>}, {pipeline_mode = #tpu.pipeline_mode<synchronous>, transform_indices = @transform_4, window_bounds = array<i64: 1, 128>}, {pipeline_mode = #tpu.pipeline_mode<synchronous>, transform_indices = @transform_5, window_bounds = array<i64: 128, 128>}, {pipeline_mode = #tpu.pipeline_mode<synchronous>, transform_indices = @transform_6, window_bounds = array<i64: 1, 128>}, {pipeline_mode = #tpu.pipeline_mode<synchronous>, transform_indices = @transform_7, window_bounds = array<i64: 128, 128>}, {pipeline_mode = #tpu.pipeline_mode<synchronous>, transform_indices = @transform_8, window_bounds = array<i64: 1, 128>}, {pipeline_mode = #tpu.pipeline_mode<synchronous>, transform_indices = @transform_9, window_bounds = array<i64: 128, 128>}, {pipeline_mode = #tpu.pipeline_mode<synchronous>, transform_indices = @transform_10, window_bounds = array<i64: 1, 128>}, {pipeline_mode = #tpu.pipeline_mode<synchronous>, transform_indices = @transform_11, window_bounds = array<i64: 128, 128>}, {pipeline_mode = #tpu.pipeline_mode<synchronous>, transform_indices = @transform_12, window_bounds = array<i64: 1, 128>}, {transform_indices = @transform_13, window_bounds = array<i64: 16, 128>}]} {
    %c0 = arith.constant 0 : index
    %c0_0 = arith.constant 0 : index
    %0 = vector.load %arg1[%c0, %c0_0] : memref<16x784xbf16, #tpu.memory_space<vmem>>, vector<16x784xbf16>
    %c0_1 = arith.constant 0 : index
    %c0_2 = arith.constant 0 : index
    %1 = vector.load %arg2[%c0_1, %c0_2] : memref<784x256xbf16, #tpu.memory_space<vmem>>, vector<784x256xbf16>
    %cst = arith.constant dense<0.000000e+00> : vector<16x256xf32>
    %2 = tpu.matmul %0, %1, %cst {dimension_numbers = #tpu.dot_dimension_numbers<[1], [0], [0], [1], [0, 0, 1, 1], [], []>} : vector<16x784xbf16>, vector<784x256xbf16>, vector<16x256xf32> -> vector<16x256xf32>
    %c0_3 = arith.constant 0 : index
    %c0_4 = arith.constant 0 : index
    %3 = vector.load %arg3[%c0_3, %c0_4] : memref<1x256xf32, #tpu.memory_space<vmem>>, vector<1x256xf32>
    %4 = vector.broadcast %3 : vector<1x256xf32> to vector<16x256xf32>
    %5 = arith.addf %2, %4 : vector<16x256xf32>
    %cst_5 = arith.constant 0.000000e+00 : f32
    %6 = vector.broadcast %cst_5 : f32 to vector<16x256xf32>
    %7 = arith.maximumf %5, %6 : vector<16x256xf32>
    %8 = arith.truncf %7 : vector<16x256xf32> to vector<16x256xbf16>
    %c0_6 = arith.constant 0 : index
    %c0_7 = arith.constant 0 : index
    %9 = vector.load %arg4[%c0_6, %c0_7] : memref<256x128xbf16, #tpu.memory_space<vmem>>, vector<256x128xbf16>
    %cst_8 = arith.constant dense<0.000000e+00> : vector<16x128xf32>
    %10 = tpu.matmul %8, %9, %cst_8 {dimension_numbers = #tpu.dot_dimension_numbers<[1], [0], [0], [1], [0, 0, 1, 1], [], []>} : vector<16x256xbf16>, vector<256x128xbf16>, vector<16x128xf32> -> vector<16x128xf32>
    %c0_9 = arith.constant 0 : index
    %c0_10 = arith.constant 0 : index
    %11 = vector.load %arg5[%c0_9, %c0_10] : memref<1x128xf32, #tpu.memory_space<vmem>>, vector<1x128xf32>
    %12 = vector.broadcast %11 : vector<1x128xf32> to vector<16x128xf32>
    %13 = arith.addf %10, %12 : vector<16x128xf32>
    %cst_11 = arith.constant 0.000000e+00 : f32
    %14 = vector.broadcast %cst_11 : f32 to vector<16x128xf32>
    %15 = arith.maximumf %13, %14 : vector<16x128xf32>
    %16 = arith.truncf %15 : vector<16x128xf32> to vector<16x128xbf16>
    %c0_12 = arith.constant 0 : index
    %c0_13 = arith.constant 0 : index
    %17 = vector.load %arg6[%c0_12, %c0_13] : memref<128x128xbf16, #tpu.memory_space<vmem>>, vector<128x128xbf16>
    %cst_14 = arith.constant dense<0.000000e+00> : vector<16x128xf32>
    %18 = tpu.matmul %16, %17, %cst_14 {dimension_numbers = #tpu.dot_dimension_numbers<[1], [0], [0], [1], [0, 0, 1, 1], [], []>} : vector<16x128xbf16>, vector<128x128xbf16>, vector<16x128xf32> -> vector<16x128xf32>
    %c0_15 = arith.constant 0 : index
    %c0_16 = arith.constant 0 : index
    %19 = vector.load %arg7[%c0_15, %c0_16] : memref<1x128xf32, #tpu.memory_space<vmem>>, vector<1x128xf32>
    %20 = vector.broadcast %19 : vector<1x128xf32> to vector<16x128xf32>
    %21 = arith.addf %18, %20 : vector<16x128xf32>
    %cst_17 = arith.constant 0.000000e+00 : f32
    %22 = vector.broadcast %cst_17 : f32 to vector<16x128xf32>
    %23 = arith.maximumf %21, %22 : vector<16x128xf32>
    %24 = arith.truncf %23 : vector<16x128xf32> to vector<16x128xbf16>
    %c0_18 = arith.constant 0 : index
    %c0_19 = arith.constant 0 : index
    %25 = vector.load %arg8[%c0_18, %c0_19] : memref<128x128xbf16, #tpu.memory_space<vmem>>, vector<128x128xbf16>
    %cst_20 = arith.constant dense<0.000000e+00> : vector<16x128xf32>
    %26 = tpu.matmul %24, %25, %cst_20 {dimension_numbers = #tpu.dot_dimension_numbers<[1], [0], [0], [1], [0, 0, 1, 1], [], []>} : vector<16x128xbf16>, vector<128x128xbf16>, vector<16x128xf32> -> vector<16x128xf32>
    %c0_21 = arith.constant 0 : index
    %c0_22 = arith.constant 0 : index
    %27 = vector.load %arg9[%c0_21, %c0_22] : memref<1x128xf32, #tpu.memory_space<vmem>>, vector<1x128xf32>
    %28 = vector.broadcast %27 : vector<1x128xf32> to vector<16x128xf32>
    %29 = arith.addf %26, %28 : vector<16x128xf32>
    %cst_23 = arith.constant 0.000000e+00 : f32
    %30 = vector.broadcast %cst_23 : f32 to vector<16x128xf32>
    %31 = arith.maximumf %29, %30 : vector<16x128xf32>
    %32 = arith.truncf %31 : vector<16x128xf32> to vector<16x128xbf16>
    %c0_24 = arith.constant 0 : index
    %c0_25 = arith.constant 0 : index
    %33 = vector.load %arg10[%c0_24, %c0_25] : memref<128x128xbf16, #tpu.memory_space<vmem>>, vector<128x128xbf16>
    %cst_26 = arith.constant dense<0.000000e+00> : vector<16x128xf32>
    %34 = tpu.matmul %32, %33, %cst_26 {dimension_numbers = #tpu.dot_dimension_numbers<[1], [0], [0], [1], [0, 0, 1, 1], [], []>} : vector<16x128xbf16>, vector<128x128xbf16>, vector<16x128xf32> -> vector<16x128xf32>
    %c0_27 = arith.constant 0 : index
    %c0_28 = arith.constant 0 : index
    %35 = vector.load %arg11[%c0_27, %c0_28] : memref<1x128xf32, #tpu.memory_space<vmem>>, vector<1x128xf32>
    %36 = vector.broadcast %35 : vector<1x128xf32> to vector<16x128xf32>
    %37 = arith.addf %34, %36 : vector<16x128xf32>
    %cst_29 = arith.constant 0.000000e+00 : f32
    %38 = vector.broadcast %cst_29 : f32 to vector<16x128xf32>
    %39 = arith.maximumf %37, %38 : vector<16x128xf32>
    %40 = arith.truncf %39 : vector<16x128xf32> to vector<16x128xbf16>
    %c0_30 = arith.constant 0 : index
    %c0_31 = arith.constant 0 : index
    %41 = vector.load %arg12[%c0_30, %c0_31] : memref<128x128xbf16, #tpu.memory_space<vmem>>, vector<128x128xbf16>
    %cst_32 = arith.constant dense<0.000000e+00> : vector<16x128xf32>
    %42 = tpu.matmul %40, %41, %cst_32 {dimension_numbers = #tpu.dot_dimension_numbers<[1], [0], [0], [1], [0, 0, 1, 1], [], []>} : vector<16x128xbf16>, vector<128x128xbf16>, vector<16x128xf32> -> vector<16x128xf32>
    %c0_33 = arith.constant 0 : index
    %c0_34 = arith.constant 0 : index
    %43 = vector.load %arg13[%c0_33, %c0_34] : memref<1x128xf32, #tpu.memory_space<vmem>>, vector<1x128xf32>
    %44 = vector.broadcast %43 : vector<1x128xf32> to vector<16x128xf32>
    %45 = arith.addf %42, %44 : vector<16x128xf32>
    %c0_35 = arith.constant 0 : index
    %c0_36 = arith.constant 0 : index
    %46 = vector.load %arg14[%c0_35, %c0_36] : memref<16x128xf32, #tpu.memory_space<vmem>>, vector<16x128xf32>
    tpu.vector_store %arg14[%c0_35, %c0_36], %45 {strides = array<i32>} : memref<16x128xf32, #tpu.memory_space<vmem>>, vector<16x128xf32>,
    return
  }
  func.func @transform_0(%arg0: i32) -> (i32, i32) {
    %c0_i32 = arith.constant 0 : i32
    %c0_i32_0 = arith.constant 0 : i32
    return %arg0, %c0_i32 : i32, i32
  }
  func.func @transform_1(%arg0: i32) -> (i32, i32) {
    %c0_i32 = arith.constant 0 : i32
    %c0_i32_0 = arith.constant 0 : i32
    %c0_i32_1 = arith.constant 0 : i32
    return %c0_i32, %c0_i32_0 : i32, i32
  }
  func.func @transform_2(%arg0: i32) -> (i32, i32) {
    %c0_i32 = arith.constant 0 : i32
    %c0_i32_0 = arith.constant 0 : i32
    %c0_i32_1 = arith.constant 0 : i32
    return %c0_i32, %c0_i32_0 : i32, i32
  }
  func.func @transform_3(%arg0: i32) -> (i32, i32) {
    %c0_i32 = arith.constant 0 : i32
    %c0_i32_0 = arith.constant 0 : i32
    %c0_i32_1 = arith.constant 0 : i32
    return %c0_i32, %c0_i32_0 : i32, i32
  }
  func.func @transform_4(%arg0: i32) -> (i32, i32) {
    %c0_i32 = arith.constant 0 : i32
    %c0_i32_0 = arith.constant 0 : i32
    %c0_i32_1 = arith.constant 0 : i32
    return %c0_i32, %c0_i32_0 : i32, i32
  }
  func.func @transform_5(%arg0: i32) -> (i32, i32) {
    %c0_i32 = arith.constant 0 : i32
    %c0_i32_0 = arith.constant 0 : i32
    %c0_i32_1 = arith.constant 0 : i32
    return %c0_i32, %c0_i32_0 : i32, i32
  }
  func.func @transform_6(%arg0: i32) -> (i32, i32) {
    %c0_i32 = arith.constant 0 : i32
    %c0_i32_0 = arith.constant 0 : i32
    %c0_i32_1 = arith.constant 0 : i32
    return %c0_i32, %c0_i32_0 : i32, i32
  }
  func.func @transform_7(%arg0: i32) -> (i32, i32) {
    %c0_i32 = arith.constant 0 : i32
    %c0_i32_0 = arith.constant 0 : i32
    %c0_i32_1 = arith.constant 0 : i32
    return %c0_i32, %c0_i32_0 : i32, i32
  }
  func.func @transform_8(%arg0: i32) -> (i32, i32) {
    %c0_i32 = arith.constant 0 : i32
    %c0_i32_0 = arith.constant 0 : i32
    %c0_i32_1 = arith.constant 0 : i32
    return %c0_i32, %c0_i32_0 : i32, i32
  }
  func.func @transform_9(%arg0: i32) -> (i32, i32) {
    %c0_i32 = arith.constant 0 : i32
    %c0_i32_0 = arith.constant 0 : i32
    %c0_i32_1 = arith.constant 0 : i32
    return %c0_i32, %c0_i32_0 : i32, i32
  }
  func.func @transform_10(%arg0: i32) -> (i32, i32) {
    %c0_i32 = arith.constant 0 : i32
    %c0_i32_0 = arith.constant 0 : i32
    %c0_i32_1 = arith.constant 0 : i32
    return %c0_i32, %c0_i32_0 : i32, i32
  }
  func.func @transform_11(%arg0: i32) -> (i32, i32) {
    %c0_i32 = arith.constant 0 : i32
    %c0_i32_0 = arith.constant 0 : i32
    %c0_i32_1 = arith.constant 0 : i32
    return %c0_i32, %c0_i32_0 : i32, i32
  }
  func.func @transform_12(%arg0: i32) -> (i32, i32) {
    %c0_i32 = arith.constant 0 : i32
    %c0_i32_0 = arith.constant 0 : i32
    %c0_i32_1 = arith.constant 0 : i32
    return %c0_i32, %c0_i32_0 : i32, i32
  }
  func.func @transform_13(%arg0: i32) -> (i32, i32) {
    %c0_i32 = arith.constant 0 : i32
    %c0_i32_0 = arith.constant 0 : i32
    return %arg0, %c0_i32 : i32, i32
  }
}

</mosaic_0001>

<bundles_post_ra>
// kernel: tpu_custom_call.1
= control target key start
LH: loop header
LB: loop body
LE: loop exit
PB: predicated region body
PF: predicated region fallthrough
CT: control target
= control target key end

     0   :  { %s3678_s0 = inlined_call_operand.hbm [shape: bf16[32,784], index: 0, kind: input, shape index: {}]   ;;  %s3679_s1 = inlined_call_operand.hbm [shape: bf16[784,256], index: 1, kind: input, shape index: {}]   ;;  %s3680_s2 = inlined_call_operand.hbm [shape: f32[1,256], index: 2, kind: input, shape index: {}]   ;;  %s3681_s3 = inlined_call_operand.hbm [shape: bf16[256,128], index: 3, kind: input, shape index: {}]   ;;  %s3682_s4 = inlined_call_operand.vmem [shape: f32[1,128], index: 4, kind: input, shape index: {}]   ;;  %s3683_s5 = inlined_call_operand.hbm [shape: bf16[128,128], index: 5, kind: input, shape index: {}]   ;;  %s3684_s6 = inlined_call_operand.vmem [shape: f32[1,128], index: 6, kind: input, shape index: {}]   ;;  %s3685_s7 = inlined_call_operand.hbm [shape: bf16[128,128], index: 7, kind: input, shape index: {}]   ;;  %s3686_s8 = inlined_call_operand.vmem [shape: f32[1,128], index: 8, kind: input, shape index: {}]   ;;  %s3687_s9 = inlined_call_operand.hbm [shape: bf16[128,128], index: 9, kind: input, shape index: {}]   ;;  %s3688_s10 = inlined_call_operand.vmem [shape: f32[1,128], index: 10, kind: input, shape index: {}]   ;;  %s3689_s11 = inlined_call_operand.hbm [shape: bf16[128,128], index: 11, kind: input, shape index: {}]   ;;  %s3690_s12 = inlined_call_operand.vmem [shape: f32[1,128], index: 12, kind: input, shape index: {}]   ;;  %s3691_s13 = inlined_call_operand.hbm [shape: f32[32,128], index: 13, kind: output, shape index: {}]  }
   0x1   :  { %3693 = sst [smem:[#allocation24_spill]] %s3679_s1 }
   0x2   :  { %3694 = sst [smem:[#allocation25_spill]] %s3680_s2 }
   0x3   :  { %3695 = sst [smem:[#allocation26_spill]] %s3681_s3 }
   0x4   :  { %3696 = sst [smem:[#allocation27_spill]] %s3683_s5 }
   0x5   :  { %3697 = sst [smem:[#allocation28_spill]] %s3685_s7 }
   0x6   :  { %3698 = sst [smem:[#allocation29_spill]] %s3687_s9 }
   0x7   :  { %3699 = sst [smem:[#allocation30_spill]] %s3689_s11 }
   0x8   :  { %3700 = sst [smem:[#allocation31_spill]] %s3690_s12 }
   0x9   :  { %3701 = sst [smem:[#allocation32_spill]] %s3691_s13 }
   0xa   :  { %18 = vsyncpa [#allocation3], 0 }
   0xb   :  { %20 = vsyncpa [#allocation3 + $0x1], 0 }
   0xc   :  { %21 = vsyncpa [#allocation6], 0 }
   0xd   :  { %22 = vsyncpa [#allocation9], 0 }
   0xe   :  { %23 = vsyncpa [#allocation12], 0 }
   0xf   :  { %24 = vsyncpa [#allocation15], 0 }
  0x10   :  { %25 = vsyncpa [#allocation4], 0 }
  0x11   :  { %27 = vsyncpa [#allocation4 + $0x1], 0  ;;  %s3417_s25 = smov 0   ;;  %s3419_s26 = smov 0  }
  0x12   :  { %s3421_s27 = smov 0   ;;  %s3423_s28 = smov 0  }
  0x13 LB: > { %s3702_s1 = sld [smem:[#allocation24_spill]]  ;;  %s3441_s15 = sadd.s32 4294967295, %s3330_s28   ;;  %s3330_s28 = sphi %s3423_s28, %s3723_s28   ;;  %s3326_s27 = sphi %s3421_s27, %s3722_s27   ;;  %s3322_s26 = sphi %s3419_s26, %s3721_s26   ;;  %s3318_s25 = sphi %s3417_s25, %s3720_s25  }
  0x14   : > { %p2081_p0 = scmp.ge.s32.totalorder %s3330_s28, 1  ;;  %p54_p1 = scmp.eq.s32.totalorder %s3441_s15, 0 }
  0x15   : > { %p342_p2 = scmp.lt.s32.totalorder %s3330_s28, 3  ;;  %s3332_s17 = smov [#allocation5]  }
  0x16   : > { %s355_s18 = sshll.u32 %s3332_s17, 4  ;;  %s3704_s3 = sld [smem:[#allocation26_spill]]  ;;  %s356_s18 = int_to_ptr.vmem [resolvable:$true] %s355_s18 }
  0x17   : > { %p3446_p3 = pnand %p2081_p0, %p342_p2  ;;  %s3333_s23 = smov [#allocation8]  }
  0x18   : > { %s381_s24 = sshll.u32 %s3333_s23, 4  ;;  %s3334_s29 = smov 128   ;;  %s382_s24 = int_to_ptr.vmem [resolvable:$true] %s381_s24 }
  0x19   : > { %s353_s14 = sshll.u32 %s3702_s1, 4  ;;  %p2910_p4 = pneg %p3446_p3  ;;  %s354_s14 = int_to_ptr.hbm [resolvable:$true] %s353_s14 }
  0x1a   : > { %s3335_s30 = smov 8   ;;  %s3336_s17 = smov 64  }
  0x1b   : > { %p3458_p6 = pnand %p2910_p4, %p54_p1  ;;  %s3337_s19 = smov 4  }
  0x1c   : > { %s379_s21 = sshll.u32 %s3704_s3, 4  ;;  %s3706_s7 = sld [smem:[#allocation28_spill]]  ;;  %s380_s21 = int_to_ptr.hbm [resolvable:$true] %s379_s21 }
  0x1d   : > { %2913 = dma.hbm_to_vmem [thread:$0]  (!%p3458_p6), %s354_s14, 12544, %s356_s18, [#allocation6], %s3334_s29, %s3334_s29, %s3335_s30  }
  0x1e   : > { %2919 = dma.hbm_to_vmem [thread:$0]  (!%p3458_p6), %s380_s21, 2048, %s382_s24, [#allocation9], %s3336_s17, %s3336_s17, %s3337_s19  }
  0x1f   : > { %s3338_s13 = smov [#allocation11]   ;;  %s3707_s2 = sld [smem:[#allocation25_spill]] }
  0x20   : > { %s415_s23 = sshll.u32 %s3338_s13, 4  ;;  %s3339_s21 = smov [#allocation7]   ;;  %s416_s23 = int_to_ptr.vmem [resolvable:$true] %s415_s23 }
  0x21   : > { %s370_s24 = sshll.u32 %s3339_s21, 4  ;;  %s3708_s5 = sld [smem:[#allocation27_spill]]  ;;  %s371_s24 = int_to_ptr.vmem [resolvable:$true] %s370_s24 }
  0x22   : > { %s413_s3 = sshll.u32 %s3706_s7, 4  ;;  %s3709_s9 = sld [smem:[#allocation29_spill]]  ;;  %s414_s3 = int_to_ptr.hbm [resolvable:$true] %s413_s3 }
  0x23   : > { %2925 = dma.hbm_to_vmem [thread:$0]  (!%p3458_p6), %s414_s3, 1024, %s416_s23, [#allocation12], %s3336_s17, %s3336_s17, %s3337_s19  }
  0x24   : > { %s3340_s14 = smov [#allocation10]   ;;  %s3341_s23 = smov [#allocation13]  }
  0x25   : > { %s368_s18 = sshll.u32 %s3707_s2, 4  ;;  %s398_s3 = sshll.u32 %s3340_s14, 4  ;;  %s369_s18 = int_to_ptr.hbm [resolvable:$true] %s368_s18  ;;  %s399_s3 = int_to_ptr.vmem [resolvable:$true] %s398_s3 }
  0x26   : > { %2916 = dma.hbm_to_vmem [thread:$0]  (!%p3458_p6), %s369_s18, 32, %s371_s24, [#allocation6]  }
  0x27   : > { %s396_s30 = sshll.u32 %s3708_s5, 4  ;;  %s432_s18 = sshll.u32 %s3341_s23, 4  ;;  %s397_s30 = int_to_ptr.hbm [resolvable:$true] %s396_s30  ;;  %s433_s18 = int_to_ptr.vmem [resolvable:$true] %s432_s18 }
  0x28   : > { %s430_s20 = sshll.u32 %s3709_s9, 4  ;;  %s3710_s11 = sld [smem:[#allocation30_spill]]  ;;  %s431_s20 = int_to_ptr.hbm [resolvable:$true] %s430_s20 }
  0x29   : > { %2922 = dma.hbm_to_vmem [thread:$0]  (!%p3458_p6), %s397_s30, 1024, %s399_s3, [#allocation9], %s3336_s17, %s3336_s17, %s3337_s19  }
  0x2a   : > { %2928 = dma.hbm_to_vmem [thread:$0]  (!%p3458_p6), %s431_s20, 1024, %s433_s18, [#allocation12], %s3336_s17, %s3336_s17, %s3337_s19  }
  0x2b   : > { %s3342_s1 = smov [#allocation14]   ;;  %s2080_s13 = sadd.s32 4294967294, %s3330_s28  }
  0x2c   : > { %s449_s30 = sshll.u32 %s3342_s1, 4  ;;  %s3508_s12 = sadd.s32 1, %s3330_s28   ;;  %s450_s30 = int_to_ptr.vmem [resolvable:$true] %s449_s30 }
  0x2d   : > { %s40_s14 = sadd.s32 1, %s3326_s27  ;;  %s37_s3 = ssub.s32 %s3330_s28, %s3508_s12 }
  0x2e   : > { %s447_s29 = sshll.u32 %s3710_s11, 4  ;;  %p47_p7 = scmp.ne.s32.totalorder %s3326_s27, %s3322_s26  ;;  %s448_s29 = int_to_ptr.hbm [resolvable:$true] %s447_s29 }
  0x2f   : > { %2931 = dma.hbm_to_vmem [thread:$0]  (!%p3458_p6), %s448_s29, 1024, %s450_s30, [#allocation15], %s3336_s17, %s3336_s17, %s3337_s19  }
  0x30   : > { %p38_p8 = scmp.eq.s32.totalorder %s37_s3, 0  ;;  %p48_p9 = scmp.eq.s32.totalorder %s3330_s28, 0 }
  0x31   : > { %p53_p10 = scmp.ne.s32.totalorder %s3322_s26, %s3318_s25  ;;  %p329_p11 = scmp.eq.s32.totalorder %s3441_s15, 1 }
  0x32   : > { %s3520_s20 = scalar_select %p38_p8, %s3326_s27, %s40_s14  }
  0x33   : > { %p49_p12 = por %p48_p9, %p47_p7  ;;  %p3524_p13 = por %p54_p1, %p53_p10 }
  0x34   : > { %3711 = sst [smem:[#allocation23_spill]] %s3520_s20  ;;  %p3528_p0 = por %p329_p11, %p47_p7 }
  0x35   : > { %p335_p2 = scmp.eq.s32.totalorder %s2080_s13, 1  ;;  %p2947_p4 = scmp.lt.s32.totalorder %s3330_s28, 2 }
  0x36   : > { %s466_s19 = sand.u32 1, %s3326_s27   ;;  %s2876_s24 = smul.u32 56, %s3330_s28 }
  0x37   : > { %p3534_p6 = por %p335_p2, %p53_p10  ;;  %s2875_s18 = smul.u32 56, %s466_s19 }
  0x38   : > { %p3538_p8 = pnand %p2947_p4, %p49_p12  ;;  %s476_s30 = scalar_lea.hbm %s3678_s0, %s2876_s24 }
  0x39   : > { %s470_s14 = scalar_lea.vmem [#allocation2], %s2875_s18  ;;  %s477_s13 = sshll.u32 %s476_s30, 4  ;;  %s478_s13 = int_to_ptr.hbm [resolvable:$true] %s477_s13 }
  0x3a   : > { %s479_s3 = sshll.u32 %s470_s14, 4  ;;  %s467_s2 = scalar_lea.sflag [#allocation3], %s466_s19  ;;  %s480_s3 = int_to_ptr.vmem [resolvable:$true] %s479_s3 }
  0x3b   : > { %s3218_s5 = sshra.s32 %s478_s13, 4  ;;  %p3222_p9 = pneg %p3538_p8  ;;  %s3219_s5 = int_to_ptr.hbm [resolvable:$true] %s3218_s5 }
  0x3c   : > { %s3220_s7 = scalar_lea.hbm %s3219_s5, 56  ;;  %s3225_s20 = scalar_lea.hbm %s3678_s0, 112 }
  0x3d   : > { %p3221_p7 = scmp.ne.s32.totalorder %s3219_s5, %s3220_s7  ;;  %p3226_p12 = scmp.lt.s32.totalorder %s3219_s5, %s3678_s0 }
  0x3e   : > { %p3227_p2 = scmp.lt.s32.totalorder %s3225_s20, %s3220_s7 }
  0x3f   : > { %p3223_p10 = pnand %p3222_p9, %p3221_p7 }
  0x40   : > { %p3228_p4 = por %p3227_p2, %p3226_p12 }
  0x41   : > { %p3224_p11 = pneg %p3223_p10 }
  0x43   : > { %p3229_p5 = pnand %p3228_p4, %p3224_p11 }
  0x45   : > { %3232 = shalt.err (!%p3229_p5)
}
  0x46   : > { %s3343_s19 = smov 448   ;;  %s3344_s18 = smov 28  }
  0x47   : > { %2935 = dma.hbm_to_vmem [thread:$0]  (!%p3538_p8), %s478_s13, 896, %s480_s3, %s467_s2, %s3343_s19, %s3343_s19, %s3344_s18  }
  0x48   : > { %491 = sbr.rel (%p3446_p3) target bundleno = 1058 (0x422), region = 72  ;;  %s3559_s9 = sand.u32 (!%p3446_p3), 1, %s3322_s26  }
  0x49   : > { %s2877_s11 = smul.u32 (!%p3446_p3), 56, %s3559_s9  ;;  %s494_s5 = scalar_lea.sflag (!%p3446_p3), [#allocation3], %s3559_s9 }
  0x4b   : > { %s3563_s7 = scalar_lea.vmem (!%p3446_p3), [#allocation2], %s2877_s11 }
  0x4d   : > { %3293 = dma.done.wait (%p3524_p13), %s494_s5, 896  }
  0x4e   : > { %3295 = vsyncadd (%p3524_p13), %s494_s5, 4294966400 }
  0x4f   : > { %3297 = dma.done.wait (%p54_p1), [#allocation6], 12576  }
  0x50   : > { %3299 = vsyncadd (%p54_p1), [#allocation6], 4294954720 }
  0x51   : > { %3301 = dma.done.wait (%p54_p1), [#allocation9], 3072  }
  0x52   : > { %3303 = vsyncadd (%p54_p1), [#allocation9], 4294964224 }
  0x53   : > { %3305 = dma.done.wait (%p54_p1), [#allocation12], 2048  }
  0x54   : > { %3307 = vsyncadd (%p54_p1), [#allocation12], 4294965248 }
  0x55   : > { %3309 = dma.done.wait (%p54_p1), [#allocation15], 1024  }
  0x56   : > { %3311 = vsyncadd (%p54_p1), [#allocation15], 4294966272  ;;  %v2188_v0 = vld [vmem:[#allocation5 + $0x70] sm:$0xf]  ;;  %v2743_v1 = vld [vmem:[#allocation5 + $0x74] sm:$0xf0] }
  0x57   : > { %v2316_v2 = vld [vmem:[#allocation5 + $0x170] sm:$0xf]  ;;  %v2189_v3 = vor.u32 %v2743_v1, %v2188_v0  ;;  %v2775_v4 = vld [vmem:[#allocation5 + $0x174] sm:$0xf0]  ;;  %v2180_v11 = vld [vmem:[#allocation5 + $0x60] sm:$0xf] }
  0x58   : > { %v2380_v5 = vld [vmem:[#allocation5 + $0x1f0] sm:$0xf]  ;;  %v2791_v6 = vld [vmem:[#allocation5 + $0x1f4] sm:$0xf0]  ;;  %v2317_v7 = vor.u32 %v2775_v4, %v2316_v2  ;;  %v2741_v13 = vld [vmem:[#allocation5 + $0x64] sm:$0xf0] }
  0x59   : > { %v2381_v8 = vor.u32 %v2791_v6, %v2380_v5  ;;  %v2252_v9 = vld [vmem:[#allocation5 + $0xf0] sm:$0xf]  ;;  %v2759_v10 = vld [vmem:[#allocation5 + $0xf4] sm:$0xf0]  ;;  %1220 = vmatpush.bf16.msra.mxu0 %v2189_v3  ;;  %v2308_v14 = vld [vmem:[#allocation5 + $0x160] sm:$0xf]  ;;  %v2181_v16 = vor.u32 %v2741_v13, %v2180_v11 }
  0x5a   : > { %v2253_v12 = vor.u32 %v2759_v10, %v2252_v9  ;;  %v2773_v15 = vld [vmem:[#allocation5 + $0x164] sm:$0xf0]  ;;  %1248 = vmatpush.bf16.msra.mxu2 %v2317_v7  ;;  %v2372_v18 = vld [vmem:[#allocation5 + $0x1e0] sm:$0xf]  ;;  %v2172_v23 = vld [vmem:[#allocation5 + $0x50] sm:$0xf] }
  0x5b   : > { %1262 = vmatpush.bf16.msra.mxu3 %v2381_v8  ;;  %v2309_v17 = vor.u32 %v2773_v15, %v2308_v14  ;;  %v2789_v19 = vld [vmem:[#allocation5 + $0x1e4] sm:$0xf0]  ;;  %v2244_v20 = vld [vmem:[#allocation5 + $0xe0] sm:$0xf]  ;;  %v2739_v24 = vld [vmem:[#allocation5 + $0x54] sm:$0xf0] }
  0x5c   : > { %1234 = vmatpush.bf16.msra.mxu1 %v2253_v12  ;;  %v2373_v21 = vor.u32 %v2789_v19, %v2372_v18  ;;  %v2757_v22 = vld [vmem:[#allocation5 + $0xe4] sm:$0xf0]  ;;  %v2300_v26 = vld [vmem:[#allocation5 + $0x150] sm:$0xf]  ;;  %v2771_v27 = vld [vmem:[#allocation5 + $0x154] sm:$0xf0]  ;;  %v2173_v29 = vor.u32 %v2739_v24, %v2172_v23 }
  0x5d   : > { %v2245_v25 = vor.u32 %v2757_v22, %v2244_v20  ;;  %v2364_v28 = vld [vmem:[#allocation5 + $0x1d0] sm:$0xf]  ;;  %1221 = vmatpush.bf16.msra.mxu0 %v2181_v16  ;;  %v2787_v30 = vld [vmem:[#allocation5 + $0x1d4] sm:$0xf0]  ;;  %v2301_v33 = vor.u32 %v2771_v27, %v2300_v26  ;;  %v2164_v35 = vld [vmem:[#allocation5 + $0x40] sm:$0xf] }
  0x5e   : > { %v2236_v31 = vld [vmem:[#allocation5 + $0xd0] sm:$0xf]  ;;  %v2755_v32 = vld [vmem:[#allocation5 + $0xd4] sm:$0xf0]  ;;  %1249 = vmatpush.bf16.msra.mxu2 %v2309_v17  ;;  %v2365_v34 = vor.u32 %v2787_v30, %v2364_v28  ;;  %v2737_v36 = vld [vmem:[#allocation5 + $0x44] sm:$0xf0] }
  0x5f   : > { %1263 = vmatpush.bf16.msra.mxu3 %v2373_v21  ;;  %v2292_v37 = vld [vmem:[#allocation5 + $0x140] sm:$0xf]  ;;  %v2237_v38 = vor.u32 %v2755_v32, %v2236_v31  ;;  %v2769_v39 = vld [vmem:[#allocation5 + $0x144] sm:$0xf0]  ;;  %v2165_v44 = vor.u32 %v2737_v36, %v2164_v35  ;;  %v2156_v47 = vld [vmem:[#allocation5 + $0x30] sm:$0xf] }
  0x60   : > { %1235 = vmatpush.bf16.msra.mxu1 %v2245_v25  ;;  %v2356_v40 = vld [vmem:[#allocation5 + $0x1c0] sm:$0xf]  ;;  %v2785_v41 = vld [vmem:[#allocation5 + $0x1c4] sm:$0xf0]  ;;  %v2293_v45 = vor.u32 %v2769_v39, %v2292_v37  ;;  %v2735_v48 = vld [vmem:[#allocation5 + $0x34] sm:$0xf0] }
  0x61   : > { %v2228_v42 = vld [vmem:[#allocation5 + $0xc0] sm:$0xf]  ;;  %v2753_v43 = vld [vmem:[#allocation5 + $0xc4] sm:$0xf0]  ;;  %1222 = vmatpush.bf16.msra.mxu0 %v2173_v29  ;;  %v2357_v46 = vor.u32 %v2785_v41, %v2356_v40  ;;  %v2284_v49 = vld [vmem:[#allocation5 + $0x130] sm:$0xf]  ;;  %v2157_v56 = vor.u32 %v2735_v48, %v2156_v47 }
  0x62   : > { %1250 = vmatpush.bf16.msra.mxu2 %v2301_v33  ;;  %v2229_v50 = vor.u32 %v2753_v43, %v2228_v42  ;;  %v2767_v51 = vld [vmem:[#allocation5 + $0x134] sm:$0xf0]  ;;  %v2348_v52 = vld [vmem:[#allocation5 + $0x1b0] sm:$0xf]  ;;  %v2148_v59 = vld [vmem:[#allocation5 + $0x20] sm:$0xf] }
  0x63   : > { %1264 = vmatpush.bf16.msra.mxu3 %v2365_v34  ;;  %v2783_v53 = vld [vmem:[#allocation5 + $0x1b4] sm:$0xf0]  ;;  %v2220_v54 = vld [vmem:[#allocation5 + $0xb0] sm:$0xf]  ;;  %v2285_v57 = vor.u32 %v2767_v51, %v2284_v49  ;;  %v2733_v60 = vld [vmem:[#allocation5 + $0x24] sm:$0xf0] }
  0x64   : > { %1236 = vmatpush.bf16.msra.mxu1 %v2237_v38  ;;  %v2751_v55 = vld [vmem:[#allocation5 + $0xb4] sm:$0xf0]  ;;  %v2349_v58 = vor.u32 %v2783_v53, %v2348_v52  ;;  %v2276_v61 = vld [vmem:[#allocation5 + $0x120] sm:$0xf]  ;;  %v2765_v63 = vld [vmem:[#allocation5 + $0x124] sm:$0xf0]  ;;  %v2149_v4 = vor.u32 %v2733_v60, %v2148_v59 }
  0x65   : > { %1223 = vmatpush.bf16.msra.mxu0 %v2165_v44  ;;  %v2221_v62 = vor.u32 %v2751_v55, %v2220_v54  ;;  %v2340_v0 = vld [vmem:[#allocation5 + $0x1a0] sm:$0xf]  ;;  %v2781_v1 = vld [vmem:[#allocation5 + $0x1a4] sm:$0xf0]  ;;  %v2140_v5 = vld [vmem:[#allocation5 + $0x10] sm:$0xf]  ;;  %v2277_v6 = vor.u32 %v2765_v63, %v2276_v61 }
  0x66   : > { %1251 = vmatpush.bf16.msra.mxu2 %v2293_v45  ;;  %v2212_v2 = vld [vmem:[#allocation5 + $0xa0] sm:$0xf]  ;;  %v2749_v3 = vld [vmem:[#allocation5 + $0xa4] sm:$0xf0]  ;;  %v2341_v7 = vor.u32 %v2781_v1, %v2340_v0  ;;  %v2731_v8 = vld [vmem:[#allocation5 + $0x14] sm:$0xf0] }
  0x67   : > { %1265 = vmatpush.bf16.msra.mxu3 %v2357_v46  ;;  %v2268_v9 = vld [vmem:[#allocation5 + $0x110] sm:$0xf]  ;;  %v2763_v10 = vld [vmem:[#allocation5 + $0x114] sm:$0xf0]  ;;  %v2213_v11 = vor.u32 %v2749_v3, %v2212_v2  ;;  %v2132_v16 = vld [vmem:[#allocation5] sm:$0xf]  ;;  %v2141_v18 = vor.u32 %v2731_v8, %v2140_v5 }
  0x68   : > { %1237 = vmatpush.bf16.msra.mxu1 %v2229_v50  ;;  %v2332_v12 = vld [vmem:[#allocation5 + $0x190] sm:$0xf]  ;;  %v2779_v13 = vld [vmem:[#allocation5 + $0x194] sm:$0xf0]  ;;  %v2729_v17 = vld [vmem:[#allocation5 + $0x4] sm:$0xf0]  ;;  %v2269_v23 = vor.u32 %v2763_v10, %v2268_v9 }
  0x69   : > { %1224 = vmatpush.bf16.msra.mxu0 %v2157_v56  ;;  %v2204_v14 = vld [vmem:[#allocation5 + $0x90] sm:$0xf]  ;;  %v2747_v15 = vld [vmem:[#allocation5 + $0x94] sm:$0xf0]  ;;  %v2260_v19 = vld [vmem:[#allocation5 + $0x100] sm:$0xf]  ;;  %v2333_v24 = vor.u32 %v2779_v13, %v2332_v12  ;;  %v2133_v35 = vor.u32 %v2729_v17, %v2132_v16 }
  0x6a   : > { %1252 = vmatpush.bf16.msra.mxu2 %v2285_v57  ;;  %v2761_v20 = vld [vmem:[#allocation5 + $0x104] sm:$0xf0]  ;;  %v2324_v21 = vld [vmem:[#allocation5 + $0x180] sm:$0xf]  ;;  %v2444_v25 = vld [vmem:[#allocation5 + $0x270] sm:$0xf]  ;;  %v2205_v28 = vor.u32 %v2747_v15, %v2204_v14 }
  0x6b   : > { %1266 = vmatpush.bf16.msra.mxu3 %v2349_v58  ;;  %v2777_v22 = vld [vmem:[#allocation5 + $0x184] sm:$0xf0]  ;;  %v2807_v26 = vld [vmem:[#allocation5 + $0x274] sm:$0xf0]  ;;  %v2742_v27 = vld [vmem:[#allocation5 + $0x74] sm:$0xf]  ;;  %v2261_v39 = vor.u32 %v2761_v20, %v2260_v19 }
  0x6c   : > { %1238 = vmatpush.bf16.msra.mxu1 %v2221_v62  ;;  %v2190_v29 = vld [vmem:[#allocation5 + $0x78] sm:$0xf0]  ;;  %v2196_v30 = vld [vmem:[#allocation5 + $0x80] sm:$0xf]  ;;  %v2745_v31 = vld [vmem:[#allocation5 + $0x84] sm:$0xf0]  ;;  %v2325_v40 = vor.u32 %v2777_v22, %v2324_v21  ;;  %v2445_v44 = vor.u32 %v2807_v26, %v2444_v25 }
  0x6d   : > { %1225 = vmatpush.bf16.msra.mxu0 %v2149_v4  ;;  %v2112_v32 = vld [vmem:[%s3563_s7 + $0x8] sm:$0xf]  ;;  %v2725_v33 = vld [vmem:[%s3563_s7 + $0x20] sm:$0xf0]  ;;  %v2516_v37 = vld [vmem:[#allocation5 + $0x300] sm:$0xf]  ;;  %v2193_v45 = vor.u32 %v2742_v27, %v2190_v29  ;;  %v2197_v49 = vor.u32 %v2745_v31, %v2196_v30 }
  0x6e   : > { %1253 = vmatpush.bf16.msra.mxu2 %v2277_v6  ;;  %v2508_v34 = vld [vmem:[#allocation5 + $0x2f0] sm:$0xf]  ;;  %v2823_v36 = vld [vmem:[#allocation5 + $0x2f4] sm:$0xf0]  ;;  %v2825_v38 = vld [vmem:[#allocation5 + $0x304] sm:$0xf0]  ;;  %v3591_v54 = vor.u32 %v2725_v33, %v2112_v32 }
  0x6f   : > { %1267 = vmatpush.bf16.msra.mxu3 %v2341_v7  ;;  %v2758_v41 = vld [vmem:[#allocation5 + $0xf4] sm:$0xf]  ;;  %v2254_v42 = vld [vmem:[#allocation5 + $0xf8] sm:$0xf0]  ;;  %v2104_v43 = vld [vmem:[%s3563_s7] sm:$0xf]  ;;  %v2517_v50 = vor.u32 %v2825_v38, %v2516_v37  ;;  %v2509_v55 = vor.u32 %v2823_v36, %v2508_v34 }
  0x70   : > { %1239 = vmatpush.bf16.msra.mxu1 %v2213_v11  ;;  %v2724_v46 = vld [vmem:[%s3563_s7 + $0x18] sm:$0xf0]  ;;  %v2722_v47 = vld [vmem:[%s3563_s7 + $0xc] sm:$0xf]  ;;  %v2114_v48 = vld [vmem:[%s3563_s7 + $0x24] sm:$0xf0]  ;;  %v2257_v59 = vor.u32 %v2758_v41, %v2254_v42 }
  0x71   : > { %1226 = vmatpush.bf16.msra.mxu0 %v2141_v18  ;;  %v2436_v51 = vld [vmem:[#allocation5 + $0x260] sm:$0xf]  ;;  %v2805_v52 = vld [vmem:[#allocation5 + $0x264] sm:$0xf0]  ;;  %v2740_v53 = vld [vmem:[#allocation5 + $0x64] sm:$0xf]  ;;  %v3595_v60 = vor.u32 %v2724_v46, %v2104_v43  ;;  %v3597_v63 = vor.u32 %v2722_v47, %v2114_v48 }
  0x72   : > { %1254 = vmatpush.bf16.msra.mxu2 %v2269_v23  ;;  %v2182_v56 = vld [vmem:[#allocation5 + $0x68] sm:$0xf0]  ;;  %v2106_v58 = vld [vmem:[%s3563_s7 + $0x1c] sm:$0xf0]  ;;  %v2500_v61 = vld [vmem:[#allocation5 + $0x2e0] sm:$0xf]  ;;  %v2437_v0 = vor.u32 %v2805_v52, %v2436_v51 }
  0x73   : > { %1268 = vmatpush.bf16.msra.mxu3 %v2333_v24  ;;  %v2721_v57 = vld [vmem:[%s3563_s7 + $0x4] sm:$0xf]  ;;  %v2821_v62 = vld [vmem:[#allocation5 + $0x2e4] sm:$0xf0]  ;;  %v2756_v1 = vld [vmem:[#allocation5 + $0xe4] sm:$0xf]  ;;  %v2185_v3 = vor.u32 %v2740_v53, %v2182_v56 }
  0x74   : > { %1240 = vmatpush.bf16.msra.mxu1 %v2205_v28  ;;  %v2246_v2 = vld [vmem:[#allocation5 + $0xe8] sm:$0xf0]  ;;  %v3599_v4 = vor.u32 %v2721_v57, %v2106_v58  ;;  %v2428_v5 = vld [vmem:[#allocation5 + $0x250] sm:$0xf]  ;;  %v2803_v6 = vld [vmem:[#allocation5 + $0x254] sm:$0xf0]  ;;  %v2501_v7 = vor.u32 %v2821_v62, %v2500_v61 }
  0x75   : > { %1227 = vmatpush.bf16.msra.mxu0 %v2133_v35  ;;  %v2738_v8 = vld [vmem:[#allocation5 + $0x54] sm:$0xf]  ;;  %v2174_v9 = vld [vmem:[#allocation5 + $0x58] sm:$0xf0]  ;;  %v2249_v10 = vor.u32 %v2756_v1, %v2246_v2  ;;  %v2492_v11 = vld [vmem:[#allocation5 + $0x2d0] sm:$0xf]  ;;  %v2429_v13 = vor.u32 %v2803_v6, %v2428_v5 }
  0x76   : > { %1255 = vmatpush.bf16.msra.mxu2 %v2261_v39  ;;  %v2819_v12 = vld [vmem:[#allocation5 + $0x2d4] sm:$0xf0]  ;;  %v2754_v14 = vld [vmem:[#allocation5 + $0xd4] sm:$0xf]  ;;  %v2238_v15 = vld [vmem:[#allocation5 + $0xd8] sm:$0xf0]  ;;  %v2177_v16 = vor.u32 %v2738_v8, %v2174_v9 }
  0x77   : > { %1269 = vmatpush.bf16.msra.mxu3 %v2325_v40  ;;  %v2420_v17 = vld [vmem:[#allocation5 + $0x240] sm:$0xf]  ;;  %v2801_v18 = vld [vmem:[#allocation5 + $0x244] sm:$0xf0]  ;;  %v2493_v19 = vor.u32 %v2819_v12, %v2492_v11  ;;  %v2736_v20 = vld [vmem:[#allocation5 + $0x44] sm:$0xf]  ;;  %v2241_v22 = vor.u32 %v2754_v14, %v2238_v15 }
  0x78   : > { %1241 = vmatpush.bf16.msra.mxu1 %v2197_v49  ;;  %1228 = vmatmul.bf16.vlgmr.msra.gmra.mxu0 %v3595_v60  ;;  %v2166_v21 = vld [vmem:[#allocation5 + $0x48] sm:$0xf0]  ;;  %v2484_v23 = vld [vmem:[#allocation5 + $0x2c0] sm:$0xf]  ;;  %v2817_v24 = vld [vmem:[#allocation5 + $0x2c4] sm:$0xf0]  ;;  %v2421_v25 = vor.u32 %v2801_v18, %v2420_v17 }
  0x79   : > { %1276 = vmatpush.bf16.msrb.mxu0 %v2445_v44  ;;  %1256 = vmatmul.bf16.vlgmr.msra.gmra.mxu2 %v3591_v54  ;;  %v2752_v26 = vld [vmem:[#allocation5 + $0xc4] sm:$0xf]  ;;  %v2230_v27 = vld [vmem:[#allocation5 + $0xc8] sm:$0xf0]  ;;  %v2169_v28 = vor.u32 %v2736_v20, %v2166_v21  ;;  %v2412_v29 = vld [vmem:[#allocation5 + $0x230] sm:$0xf]  ;;  %v2485_v31 = vor.u32 %v2817_v24, %v2484_v23 }
  0x7a   : > { %1311 = vmatpush.bf16.msrb.mxu2 %v2517_v50  ;;  %1270 = vmatmul.bf16.vlgmr.msra.gmra.mxu3 %v3597_v63  ;;  %v2799_v30 = vld [vmem:[#allocation5 + $0x234] sm:$0xf0]  ;;  %v2734_v32 = vld [vmem:[#allocation5 + $0x34] sm:$0xf]  ;;  %v2158_v33 = vld [vmem:[#allocation5 + $0x38] sm:$0xf0]  ;;  %v2233_v35 = vor.u32 %v2752_v26, %v2230_v27 }
  0x7b   : > { %1318 = vmatpush.bf16.msrb.mxu3 %v2193_v45  ;;  %1242 = vmatmul.bf16.vlgmr.msra.gmra.mxu1 %v3599_v4  ;;  %v2476_v34 = vld [vmem:[#allocation5 + $0x2b0] sm:$0xf]  ;;  %v2815_v36 = vld [vmem:[#allocation5 + $0x2b4] sm:$0xf0]  ;;  %v2128_v37 = vld [vmem:[%s3563_s7 + $0x18] sm:$0xf]  ;;  %v2413_v39 = vor.u32 %v2799_v30, %v2412_v29  ;;  %v2161_v42 = vor.u32 %v2734_v32, %v2158_v33 }
  0x7c   : > { %1290 = vmatpush.bf16.msrb.mxu1 %v2509_v55  ;;  %v2727_v38 = vld [vmem:[%s3563_s7 + $0x30] sm:$0xf0]  ;;  %v2750_v40 = vld [vmem:[#allocation5 + $0xb4] sm:$0xf]  ;;  %v2404_v43 = vld [vmem:[#allocation5 + $0x220] sm:$0xf]  ;;  %v2477_v45 = vor.u32 %v2815_v36, %v2476_v34 }
  0x7d   : > { %1277 = vmatpush.bf16.msrb.mxu0 %v2437_v0  ;;  %v2222_v41 = vld [vmem:[#allocation5 + $0xb8] sm:$0xf0]  ;;  %v2797_v44 = vld [vmem:[#allocation5 + $0x224] sm:$0xf0]  ;;  %v2732_v46 = vld [vmem:[#allocation5 + $0x24] sm:$0xf]  ;;  %v3607_v48 = vor.u32 %v2727_v38, %v2128_v37 }
  0x7e   : > { %1332 = vmatpush.bf16.msra.mxu2 %v2257_v59  ;;  %v2150_v47 = vld [vmem:[#allocation5 + $0x28] sm:$0xf0]  ;;  %v2225_v49 = vor.u32 %v2750_v40, %v2222_v41  ;;  %v2468_v50 = vld [vmem:[#allocation5 + $0x2a0] sm:$0xf]  ;;  %v2813_v51 = vld [vmem:[#allocation5 + $0x2a4] sm:$0xf0]  ;;  %v2405_v52 = vor.u32 %v2797_v44, %v2404_v43 }
  0x7f   : > { %1319 = vmatpush.bf16.msrb.mxu3 %v2185_v3  ;;  %vm1216_vm0 = vcmask 130048   ;;  %v2748_v53 = vld [vmem:[#allocation5 + $0xa4] sm:$0xf]  ;;  %v2214_v55 = vld [vmem:[#allocation5 + $0xa8] sm:$0xf0]  ;;  %v2153_v56 = vor.u32 %v2732_v46, %v2150_v47  ;;  %v2469_v61 = vor.u32 %v2813_v51, %v2468_v50  ;;  %s2101_s3 = sshll.u32 %s3559_s9, 4 }
  0x80   : > { %1291 = vmatpush.bf16.msrb.mxu1 %v2501_v7  ;;  %v2396_v57 = vld [vmem:[#allocation5 + $0x210] sm:$0xf]  ;;  %v2795_v58 = vld [vmem:[#allocation5 + $0x214] sm:$0xf0]  ;;  %v2730_v59 = vld [vmem:[#allocation5 + $0x14] sm:$0xf]  ;;  %v2217_v2 = vor.u32 %v2748_v53, %v2214_v55 }
  0x81   : > { %1278 = vmatpush.bf16.msrb.mxu0 %v2429_v13  ;;  %v2142_v62 = vld [vmem:[#allocation5 + $0x18] sm:$0xf0]  ;;  %v2460_v0 = vld [vmem:[#allocation5 + $0x290] sm:$0xf]  ;;  %v2811_v1 = vld [vmem:[#allocation5 + $0x294] sm:$0xf0]  ;;  %v2397_v7 = vor.u32 %v2795_v58, %v2396_v57 }
  0x82   : > { %1333 = vmatpush.bf16.msra.mxu2 %v2249_v10  ;;  %v2746_v3 = vld [vmem:[#allocation5 + $0x94] sm:$0xf]  ;;  %v2206_v5 = vld [vmem:[#allocation5 + $0x98] sm:$0xf0]  ;;  %v2388_v6 = vld [vmem:[#allocation5 + $0x200] sm:$0xf]  ;;  %v2145_v11 = vor.u32 %v2730_v59, %v2142_v62  ;;  %v2461_v15 = vor.u32 %v2811_v1, %v2460_v0 }
  0x83   : > { %1320 = vmatpush.bf16.msrb.mxu3 %v2177_v16  ;;  %v2793_v8 = vld [vmem:[#allocation5 + $0x204] sm:$0xf0]  ;;  %v2728_v9 = vld [vmem:[#allocation5 + $0x4] sm:$0xf]  ;;  %v2134_v10 = vld [vmem:[#allocation5 + $0x8] sm:$0xf0] }
  0x84   : > { %1292 = vmatpush.bf16.msrb.mxu1 %v2493_v19  ;;  %v2774_v12 = vld [vmem:[#allocation5 + $0x174] sm:$0xf]  ;;  %v2318_v13 = vld [vmem:[#allocation5 + $0x178] sm:$0xf0]  ;;  %v2452_v17 = vld [vmem:[#allocation5 + $0x280] sm:$0xf]  ;;  %v2209_v19 = vor.u32 %v2746_v3, %v2206_v5  ;;  %v2389_v23 = vor.u32 %v2793_v8, %v2388_v6  ;;  %v2137_v27 = vor.u32 %v2728_v9, %v2134_v10 }
  0x85   : > { %1279 = vmatpush.bf16.msrb.mxu0 %v2421_v25  ;;  %v2806_v14 = vld [vmem:[#allocation5 + $0x274] sm:$0xf]  ;;  %v2446_v16 = vld [vmem:[#allocation5 + $0x278] sm:$0xf0]  ;;  %v2809_v18 = vld [vmem:[#allocation5 + $0x284] sm:$0xf0] }
  0x86   : > { %1334 = vmatpush.bf16.msra.mxu2 %v2241_v22  ;;  %v2120_v20 = vld [vmem:[%s3563_s7 + $0x10] sm:$0xf]  ;;  %v2726_v21 = vld [vmem:[%s3563_s7 + $0x28] sm:$0xf0]  ;;  %v2744_v22 = vld [vmem:[#allocation5 + $0x84] sm:$0xf]  ;;  %v2449_v32 = vor.u32 %v2806_v14, %v2446_v16  ;;  %v2453_v33 = vor.u32 %v2809_v18, %v2452_v17 }
  0x87   : > { %1321 = vmatpush.bf16.msrb.mxu3 %v2169_v28  ;;  %v2198_v24 = vld [vmem:[#allocation5 + $0x88] sm:$0xf0]  ;;  %v2790_v25 = vld [vmem:[#allocation5 + $0x1f4] sm:$0xf]  ;;  %v2382_v26 = vld [vmem:[#allocation5 + $0x1f8] sm:$0xf0]  ;;  %v2321_v28 = vor.u32 %v2774_v12, %v2318_v13  ;;  %v3615_v37 = vor.u32 %v2726_v21, %v2120_v20 }
  0x88   : > { %1293 = vmatpush.bf16.msrb.mxu1 %v2485_v31  ;;  %v2822_v29 = vld [vmem:[#allocation5 + $0x2f4] sm:$0xf]  ;;  %v2510_v30 = vld [vmem:[#allocation5 + $0x2f8] sm:$0xf0]  ;;  %v2122_v34 = vld [vmem:[%s3563_s7 + $0x2c] sm:$0xf0]  ;;  %v2201_v38 = vor.u32 %v2744_v22, %v2198_v24  ;;  %v2385_v41 = vor.u32 %v2790_v25, %v2382_v26 }
  0x89   : > { %1280 = vmatpush.bf16.msrb.mxu0 %v2413_v39  ;;  %2522 = vmatmul.msk.bf16.vlgmr.msrb.gmra.mxu2 %vm1216_vm0, %v3607_v48  ;;  %v2723_v31 = vld [vmem:[%s3563_s7 + $0x14] sm:$0xf]  ;;  %v2310_v36 = vld [vmem:[#allocation5 + $0x168] sm:$0xf0]  ;;  %v2770_v51 = vld [vmem:[#allocation5 + $0x154] sm:$0xf] }
  0x8a   : > { %1335 = vmatpush.bf16.msra.mxu2 %v2233_v35  ;;  %v2772_v35 = vld [vmem:[#allocation5 + $0x164] sm:$0xf]  ;;  %v2438_v40 = vld [vmem:[#allocation5 + $0x268] sm:$0xf0]  ;;  %v3617_v44 = vor.u32 %v2723_v31, %v2122_v34  ;;  %v2802_v53 = vld [vmem:[#allocation5 + $0x254] sm:$0xf] }
  0x8b   : > { %1322 = vmatpush.bf16.msrb.mxu3 %v2161_v42  ;;  %v2804_v39 = vld [vmem:[#allocation5 + $0x264] sm:$0xf]  ;;  %v2513_v42 = vor.u32 %v2822_v29, %v2510_v30  ;;  %v2374_v46 = vld [vmem:[#allocation5 + $0x1e8] sm:$0xf0]  ;;  %v2430_v55 = vld [vmem:[#allocation5 + $0x258] sm:$0xf0] }
  0x8c   : > { %1294 = vmatpush.bf16.msrb.mxu1 %v2477_v45  ;;  %v2788_v43 = vld [vmem:[#allocation5 + $0x1e4] sm:$0xf]  ;;  %v2313_v45 = vor.u32 %v2772_v35, %v2310_v36  ;;  %v2441_v50 = vor.u32 %v2804_v39, %v2438_v40  ;;  %v2786_v58 = vld [vmem:[#allocation5 + $0x1d4] sm:$0xf]  ;;  %v2494_v0 = vld [vmem:[#allocation5 + $0x2d8] sm:$0xf0]  ;;  %v2433_v1 = vor.u32 %v2802_v53, %v2430_v55 }
  0x8d   : > { %1281 = vmatpush.bf16.msrb.mxu0 %v2405_v52  ;;  %v2820_v47 = vld [vmem:[#allocation5 + $0x2e4] sm:$0xf]  ;;  %v2302_v52 = vld [vmem:[#allocation5 + $0x158] sm:$0xf0]  ;;  %v2818_v62 = vld [vmem:[#allocation5 + $0x2d4] sm:$0xf] }
  0x8e   : > { %1336 = vmatpush.bf16.msra.mxu2 %v2225_v49  ;;  %v2502_v49 = vld [vmem:[#allocation5 + $0x2e8] sm:$0xf0]  ;;  %v2305_v59 = vor.u32 %v2770_v51, %v2302_v52  ;;  %v2800_v5 = vld [vmem:[#allocation5 + $0x244] sm:$0xf]  ;;  %v2497_v10 = vor.u32 %v2818_v62, %v2494_v0  ;;  %v2766_v13 = vld [vmem:[#allocation5 + $0x134] sm:$0xf] }
  0x8f   : > { %1323 = vmatpush.bf16.msrb.mxu3 %v2153_v56  ;;  %v2377_v56 = vor.u32 %v2788_v43, %v2374_v46  ;;  %v2505_v57 = vor.u32 %v2820_v47, %v2502_v49  ;;  %v2294_v3 = vld [vmem:[#allocation5 + $0x148] sm:$0xf0]  ;;  %v2798_v17 = vld [vmem:[#allocation5 + $0x234] sm:$0xf]  ;;  %v2414_v18 = vld [vmem:[#allocation5 + $0x238] sm:$0xf0] }
  0x90   : > { %1295 = vmatpush.bf16.msrb.mxu1 %v2469_v61  ;;  %v2366_v61 = vld [vmem:[#allocation5 + $0x1d8] sm:$0xf0]  ;;  %v2422_v6 = vld [vmem:[#allocation5 + $0x248] sm:$0xf0]  ;;  %v2814_v22 = vld [vmem:[#allocation5 + $0x2b4] sm:$0xf]  ;;  %v2417_v24 = vor.u32 %v2798_v17, %v2414_v18 }
  0x91   : > { %1282 = vmatpush.bf16.msrb.mxu0 %v2397_v7  ;;  %v2784_v7 = vld [vmem:[#allocation5 + $0x1c4] sm:$0xf]  ;;  %v2358_v8 = vld [vmem:[#allocation5 + $0x1c8] sm:$0xf0]  ;;  %v2369_v9 = vor.u32 %v2786_v58, %v2366_v61  ;;  %v2425_v16 = vor.u32 %v2800_v5, %v2422_v6  ;;  %v2350_v21 = vld [vmem:[#allocation5 + $0x1b8] sm:$0xf0] }
  0x92   : > { %1337 = vmatpush.bf16.msra.mxu2 %v2217_v2  ;;  %v2768_v2 = vld [vmem:[#allocation5 + $0x144] sm:$0xf]  ;;  %v2486_v12 = vld [vmem:[#allocation5 + $0x2c8] sm:$0xf0]  ;;  %v2270_v39 = vld [vmem:[#allocation5 + $0x118] sm:$0xf0] }
  0x93   : > { %1324 = vmatpush.bf16.msrb.mxu3 %v2145_v11  ;;  %v2816_v11 = vld [vmem:[#allocation5 + $0x2c4] sm:$0xf]  ;;  %v2297_v14 = vor.u32 %v2768_v2, %v2294_v3  ;;  %v2278_v26 = vld [vmem:[#allocation5 + $0x128] sm:$0xf0]  ;;  %v2794_v40 = vld [vmem:[#allocation5 + $0x214] sm:$0xf] }
  0x94   : > { %1296 = vmatpush.bf16.msrb.mxu1 %v2461_v15  ;;  %v2286_v15 = vld [vmem:[#allocation5 + $0x138] sm:$0xf0]  ;;  %v2764_v25 = vld [vmem:[#allocation5 + $0x124] sm:$0xf]  ;;  %v2470_v35 = vld [vmem:[#allocation5 + $0x2a8] sm:$0xf0] }
  0x95   : > { %1283 = vmatpush.bf16.msrb.mxu0 %v2389_v23  ;;  %v2289_v20 = vor.u32 %v2766_v13, %v2286_v15  ;;  %v2478_v23 = vld [vmem:[#allocation5 + $0x2b8] sm:$0xf0]  ;;  %v2780_v31 = vld [vmem:[#allocation5 + $0x1a4] sm:$0xf]  ;;  %v2810_v49 = vld [vmem:[#allocation5 + $0x294] sm:$0xf] }
  0x96   : > { %1338 = vmatpush.bf16.msra.mxu2 %v2209_v19  ;;  %v2782_v19 = vld [vmem:[#allocation5 + $0x1b4] sm:$0xf]  ;;  %v2481_v30 = vor.u32 %v2814_v22, %v2478_v23  ;;  %v2812_v34 = vld [vmem:[#allocation5 + $0x2a4] sm:$0xf]  ;;  %v2334_v47 = vld [vmem:[#allocation5 + $0x198] sm:$0xf0] }
  0x97   : > { %1325 = vmatpush.bf16.msrb.mxu3 %v2137_v27  ;;  %v2796_v27 = vld [vmem:[#allocation5 + $0x224] sm:$0xf]  ;;  %v2353_v29 = vor.u32 %v2782_v19, %v2350_v21  ;;  %v2473_v43 = vor.u32 %v2812_v34, %v2470_v35  ;;  %v2262_v53 = vld [vmem:[#allocation5 + $0x108] sm:$0xf0]  ;;  %v2826_v15 = vld [vmem:[#allocation8] sm:$0xff]  ;;  %s3716_s24 = sld [smem:[#allocation31_spill]] }
  0x98   : > { %1297 = vmatpush.bf16.msrb.mxu1 %v2453_v33  ;;  %1284 = vmatmul.bf16.vlgmr.msrb.gmra.mxu0 %v3615_v37  ;;  %v2342_v33 = vld [vmem:[#allocation5 + $0x1a8] sm:$0xf0]  ;;  %v2760_v52 = vld [vmem:[#allocation5 + $0x104] sm:$0xf]  ;;  %s2874_s19 = sshll.u32 %s3441_s15, 4  ;;  %s3717_s5 = sld [smem:[#allocation32_spill]] }
  0x99   : > { %1346 = vmatpush.bf16.msra.mxu0 %v2321_v28  ;;  %v2406_v28 = vld [vmem:[#allocation5 + $0x228] sm:$0xf0]  ;;  %v2792_v55 = vld [vmem:[#allocation5 + $0x204] sm:$0xf]  ;;  %v2265_v62 = vor.u32 %v2760_v52, %v2262_v53  ;;  %v2835_v53 = vld [vmem:[#allocation8 + $0x48] sm:$0xff]  ;;  %s575_s2 = scalar_lea.vmem [#allocation16], %s2101_s3 }
  0x9a   : > { %1339 = vmatpush.bf16.msra.mxu2 %v2201_v38  ;;  %1326 = vmatmul.bf16.vlgmr.msrb.gmra.mxu3 %v3595_v60  ;;  %v2489_v60 = vor.u32 %v2816_v11, %v2486_v12  ;;  %v2409_v36 = vor.u32 %v2796_v27, %v2406_v28  ;;  %v2762_v38 = vld [vmem:[#allocation5 + $0x114] sm:$0xf]  ;;  %v2518_v58 = vld [vmem:[#allocation5 + $0x308] sm:$0xf0]  ;;  %v2776_v0 = vld [vmem:[#allocation5 + $0x184] sm:$0xf] }
  0x9b   : > { %1374 = vmatpush.bf16.msra.mxu3 %v2449_v32  ;;  %1298 = vmatmul.bf16.vlgmr.msrb.gmra.mxu1 %v3617_v44  ;;  %v2281_v32 = vor.u32 %v2764_v25, %v2278_v26  ;;  %v2273_v46 = vor.u32 %v2762_v38, %v2270_v39  ;;  %v2808_v3 = vld [vmem:[#allocation5 + $0x284] sm:$0xf]  ;;  %v2454_v5 = vld [vmem:[#allocation5 + $0x288] sm:$0xf0]  ;;  %v2831_v11 = vld [vmem:[#allocation8 + $0x28] sm:$0xff]  ;;  %s1937_s16 = sshll.u32 %s575_s2, 4  ;;  %s1938_s16 = int_to_ptr.vmem [resolvable:$true] %s1937_s16 }
  0x9c   : > { %1360 = vmatpush.bf16.msra.mxu1 %v2385_v41  ;;  %v2398_v41 = vld [vmem:[#allocation5 + $0x218] sm:$0xf0]  ;;  %v2830_v12 = vld [vmem:[#allocation8 + $0x20] sm:$0xff]  ;;  %v2829_v13 = vld [vmem:[#allocation8 + $0x18] sm:$0xff]  ;;  %s1925_s22 = scalar_lea.sflag [#allocation4], %s3559_s9 }
  0x9d   : > { %1347 = vmatpush.bf16.msra.mxu0 %v2313_v45  ;;  %1340 = vmatmul.bf16.vlgmr.msra.gmra.mxu2 %v3599_v4  ;;  %v2361_v4 = vor.u32 %v2784_v7, %v2358_v8  ;;  %v2778_v45 = vld [vmem:[#allocation5 + $0x194] sm:$0xf]  ;;  %v2401_v51 = vor.u32 %v2794_v40, %v2398_v41  ;;  %v2457_v8 = vor.u32 %v2808_v3, %v2454_v5  ;;  %v2841_v22 = vld [vmem:[#allocation8 + $0x78] sm:$0xff]  ;;  %v2840_v27 = vld [vmem:[#allocation8 + $0x70] sm:$0xff] }
  0x9e   : > { %1388 = vmatpush.bf16.msrb.mxu2 %v2513_v42  ;;  %v2345_v42 = vor.u32 %v2780_v31, %v2342_v33  ;;  %v2839_v33 = vld [vmem:[#allocation8 + $0x68] sm:$0xff]  ;;  %v2838_v38 = vld [vmem:[#allocation8 + $0x60] sm:$0xff]  ;;  %s1936_s7 = scalar_lea.hbm %s3717_s5, %s2874_s19  ;;  %s3268_s14 = scalar_lea.hbm %s3717_s5, 32 }
  0x9f   : > { %1375 = vmatpush.bf16.msra.mxu3 %v2441_v50  ;;  %v2462_v50 = vld [vmem:[#allocation5 + $0x298] sm:$0xf0]  ;;  %s1939_s20 = sshll.u32 %s1936_s7, 4  ;;  %s1940_s20 = int_to_ptr.hbm [resolvable:$true] %s1939_s20 }
  0xa0   : > { %1361 = vmatpush.bf16.msra.mxu1 %v2377_v56  ;;  %v2390_v56 = vld [vmem:[#allocation5 + $0x208] sm:$0xf0]  ;;  %v2465_v61 = vor.u32 %v2810_v49, %v2462_v50  ;;  %v2836_v50 = vld [vmem:[#allocation8 + $0x50] sm:$0xff]  ;;  %s3262_s21 = sshra.s32 %s1940_s20, 4  ;;  %s3263_s21 = int_to_ptr.hbm [resolvable:$true] %s3262_s21 }
  0xa1   : > { %1348 = vmatpush.bf16.msra.mxu0 %v2305_v59  ;;  %v2337_v59 = vor.u32 %v2778_v45, %v2334_v47  ;;  %v2393_v2 = vor.u32 %v2792_v55, %v2390_v56  ;;  %v2837_v45 = vld [vmem:[#allocation8 + $0x58] sm:$0xff]  ;;  %v2834_v56 = vld [vmem:[#allocation8 + $0x40] sm:$0xff]  ;;  %s3264_s15 = scalar_lea.hbm %s3263_s21, 16  ;;  %p3269_p13 = scmp.lt.s32.totalorder %s3263_s21, %s3717_s5 }
  0xa2   : > { %1389 = vmatpush.bf16.msrb.mxu2 %v2505_v57  ;;  %v2824_v57 = vld [vmem:[#allocation5 + $0x304] sm:$0xf]  ;;  %p3265_p1 = scmp.ne.s32.totalorder %s3263_s21, %s3264_s15  ;;  %p3270_p8 = scmp.lt.s32.totalorder %s3268_s14, %s3264_s15 }
  0xa3   : > { %1376 = vmatpush.bf16.msra.mxu3 %v2433_v1  ;;  %v2326_v1 = vld [vmem:[#allocation5 + $0x188] sm:$0xf0]  ;;  %v2521_v6 = vor.u32 %v2824_v57, %v2518_v58 }
  0xa4   : > { %1362 = vmatpush.bf16.msra.mxu1 %v2369_v9  ;;  %v2329_v7 = vor.u32 %v2776_v0, %v2326_v1  ;;  %v2833_v9 = vld [vmem:[#allocation8 + $0x38] sm:$0xff]  ;;  %p3266_p3 = pnand %p3265_p1, %p3528_p0  ;;  %p3271_p7 = por %p3270_p8, %p3269_p13 }
  0xa5   : > { %1349 = vmatpush.bf16.msra.mxu0 %v2297_v14 }
  0xa6   : > { %1390 = vmatpush.bf16.msrb.mxu2 %v2497_v10  ;;  %v2832_v10 = vld [vmem:[#allocation8 + $0x30] sm:$0xff]  ;;  %p3267_p5 = pneg %p3266_p3 }
  0xa7   : > { %1377 = vmatpush.bf16.msra.mxu3 %v2425_v16 }
  0xa8   : > { %1363 = vmatpush.bf16.msra.mxu1 %v2361_v4  ;;  %p3272_p9 = pnand %p3271_p7, %p3267_p5 }
  0xa9   : > { %1350 = vmatpush.bf16.msra.mxu0 %v2289_v20 }
  0xaa   : > { %1391 = vmatpush.bf16.msrb.mxu2 %v2489_v60 }
  0xab   : > { %1378 = vmatpush.bf16.msra.mxu3 %v2417_v24 }
  0xac   : > { %1364 = vmatpush.bf16.msra.mxu1 %v2353_v29 }
  0xad   : > { %1351 = vmatpush.bf16.msra.mxu0 %v2281_v32 }
  0xae   : > { %1392 = vmatpush.bf16.msrb.mxu2 %v2481_v30 }
  0xaf   : > { %1379 = vmatpush.bf16.msra.mxu3 %v2409_v36 }
  0xb0   : > { %1365 = vmatpush.bf16.msra.mxu1 %v2345_v42 }
  0xb1   : > { %1352 = vmatpush.bf16.msra.mxu0 %v2273_v46 }
  0xb2   : > { %1393 = vmatpush.bf16.msrb.mxu2 %v2473_v43 }
  0xb3   : > { %1380 = vmatpush.bf16.msra.mxu3 %v2401_v51 }
  0xb4   : > { %1366 = vmatpush.bf16.msra.mxu1 %v2337_v59 }
  0xb5   : > { %1353 = vmatpush.bf16.msra.mxu0 %v2265_v62 }
  0xb6   : > { %1394 = vmatpush.bf16.msrb.mxu2 %v2465_v61 }
  0xb7   : > { %1381 = vmatpush.bf16.msra.mxu3 %v2393_v2 }
  0xb8   : > { %1367 = vmatpush.bf16.msra.mxu1 %v2329_v7  ;;  %1354 = vmatmul.bf16.vlgmr.msra.gmra.mxu0 %v3591_v54  ;;  %v2828_v54 = vld [vmem:[#allocation8 + $0x10] sm:$0xff] }
  0xb9   : > { %1409 = vmatpush.bf16.msrb.mxu0 %v2521_v6 }
  0xba   : > { %1382 = vmatmul.bf16.vlgmr.msra.gmra.mxu3 %v3615_v37  ;;  %1395 = vmatpush.bf16.msrb.mxu2 %v2457_v8  ;;  %v2827_v37 = vld [vmem:[#allocation8 + $0x8] sm:$0xff] }
  0xbb   : > { %1368 = vmatmul.bf16.vlgmr.msra.gmra.mxu1 %v3597_v63  ;;  %v685_v63 = vld [vmem:[#allocation7] sm:$0x3]  ;;  %1568 = vmatpush.bf16.msrb.mxu3 %v2841_v22  ;;  %v2846_v22 = vld [vmem:[#allocation10 + $0x20] sm:$0xff] }
  0xbc   : > { %1554 = vmatpush.bf16.msrb.mxu1 %v2833_v9  ;;  %v688_v57 = vperm.slane %v685_v63, 1 }
  0xbd   : > { %1396 = vmatmul.bf16.vlgmr.msrb.gmra.mxu2 %v3617_v44 }
  0xbf   : > { %1569 = vmatpush.bf16.msrb.mxu3 %v2840_v27  ;;  %v2857_v27 = vld [vmem:[#allocation11 + $0x38] sm:$0xff] }
  0xc0   : > { %1555 = vmatpush.bf16.msrb.mxu1 %v2832_v10  ;;  %1738 = vmatpush.bf16.msra.mxu2 %v2857_v27 }
  0xc3   : > { %1570 = vmatpush.bf16.msrb.mxu3 %v2839_v33  ;;  %v3003_v33 = vld [vmem:[%s3682_s4] ss:$0 sm:$0xff] }
  0xc4   : > { %1556 = vmatpush.bf16.msrb.mxu1 %v2831_v11 }
  0xc7   : > { %1571 = vmatpush.bf16.msrb.mxu3 %v2838_v38 }
  0xc8   : > { %2523 = vmatmul.msk.bf16.vlgmr.msrb.gmra.mxu0 %vm1216_vm0, %v3607_v48  ;;  %1557 = vmatpush.bf16.msrb.mxu1 %v2830_v12  ;;  %v687_v48 = vperm.slane %v685_v63, 0 }
  0xcb   : > { %1572 = vmatpush.bf16.msrb.mxu3 %v2837_v45  ;;  %v2853_v45 = vld [vmem:[#allocation11 + $0x18] sm:$0xff] }
  0xcc   : > { %1558 = vmatpush.bf16.msrb.mxu1 %v2829_v13 }
  0xcf   : > { %1573 = vmatpush.bf16.msrb.mxu3 %v2836_v50  ;;  %v2865_v50 = vld [vmem:[#allocation13 + $0x38] sm:$0xff] }
  0xd0   : > { %1559 = vmatpush.bf16.msrb.mxu1 %v2828_v54 }
  0xd3   : > { %1574 = vmatpush.bf16.msrb.mxu3 %v2835_v53  ;;  %v2862_v53 = vld [vmem:[#allocation13 + $0x20] sm:$0xff] }
  0xd4   : > { %1560 = vmatpush.bf16.msrb.mxu1 %v2827_v37 }
  0xd7   : > { %1575 = vmatpush.bf16.msrb.mxu3 %v2834_v56  ;;  %v3004_v56 = vld [vmem:[%s3684_s6] ss:$0 sm:$0xff] }
  0xd8   : > { %1561 = vmatpush.bf16.msrb.mxu1 %v2826_v15 }
  0xdc   : > { %1823 = vmatpush.bf16.msra.mxu1 %v2865_v50 }
  0xf5   : > { %v1229_v14 = vpop.f32.mrf.mxu0 }
  0xf6   : > { %v1230_v17 = vadd.f32 %v1229_v14, %v687_v48 }
  0xf8   : > { %v1243_v16 = vpop.f32.mrf.mxu1 }
  0xf9   : > { %v1244_v60 = vadd.f32 %v1243_v16, %v1230_v17 }
  0xfc   : > { %v1257_v44 = vpop.f32.mrf.mxu2 }
  0xfd   : > { %v1231_v18 = vpop.f32.mrf.mxu0  ;;  %v1271_v19 = vpop.f32.mrf.mxu3  ;;  %v1258_v23 = vadd.f32 %v1257_v44, %v1244_v60 }
  0xfe   : > { %v1232_v21 = vadd.f32 %v1231_v18, %v687_v48 }
  0xff   : > { %v1272_v28 = vadd.f32 %v1271_v19, %v1258_v23  ;;  %v2849_v19 = vld [vmem:[#allocation10 + $0x38] sm:$0xff] }
 0x100   : > { %v1245_v20 = vpop.f32.mrf.mxu1  ;;  %1653 = vmatpush.bf16.msra.mxu0 %v2849_v19  ;;  %v2845_v23 = vld [vmem:[#allocation10 + $0x18] sm:$0xff] }
 0x101   : > { %v1246_v24 = vadd.f32 %v1245_v20, %v1232_v21  ;;  %v2848_v20 = vld [vmem:[#allocation10 + $0x30] sm:$0xff]  ;;  %v2847_v21 = vld [vmem:[#allocation10 + $0x28] sm:$0xff] }
 0x104   : > { %v1259_v4 = vpop.f32.mrf.mxu2  ;;  %1654 = vmatpush.bf16.msra.mxu0 %v2848_v20 }
 0x105   : > { %v1260_v30 = vadd.f32 %v1259_v4, %v1246_v24  ;;  %v1273_v32 = vpop.f32.mrf.mxu3  ;;  %v2844_v24 = vld [vmem:[#allocation10 + $0x10] sm:$0xff] }
 0x107   : > { %v1274_v34 = vadd.f32 %v1273_v32, %v1260_v30  ;;  %v2854_v30 = vld [vmem:[#allocation11 + $0x20] sm:$0xff] }
 0x108   : > { %1655 = vmatpush.bf16.msra.mxu0 %v2847_v21 }
 0x10c   : > { %v1313_v26 = vpop.f32.mrf.mxu2  ;;  %1656 = vmatpush.bf16.msra.mxu0 %v2846_v22 }
 0x110   : > { %1657 = vmatpush.bf16.msra.mxu0 %v2845_v23  ;;  %v3007_v23 = vld [vmem:[%s3716_s24] ss:$0 sm:$0xff] }
 0x114   : > { %v1315_v41 = vpop.f32.mrf.mxu2  ;;  %1658 = vmatpush.bf16.msra.mxu0 %v2844_v24 }
 0x115   : > { %v1285_v25 = vpop.f32.mrf.mxu0 }
 0x116   : > { %v1286_v31 = vadd.f32 %v1285_v25, %v1272_v28  ;;  %v2843_v25 = vld [vmem:[#allocation10 + $0x8] sm:$0xff]  ;;  %v2856_v28 = vld [vmem:[#allocation11 + $0x30] sm:$0xff] }
 0x117   : > { %1739 = vmatpush.bf16.msra.mxu2 %v2856_v28 }
 0x118   : > { %v1299_v29 = vpop.f32.mrf.mxu1  ;;  %1659 = vmatpush.bf16.msra.mxu0 %v2843_v25 }
 0x119   : > { %v1300_v35 = vadd.f32 %v1299_v29, %v1286_v31  ;;  %v2855_v29 = vld [vmem:[#allocation11 + $0x28] sm:$0xff] }
 0x11b   : > { %v1314_v42 = vadd.f32 %v1313_v26, %v1300_v35  ;;  %v2842_v26 = vld [vmem:[#allocation10] sm:$0xff]  ;;  %1740 = vmatpush.bf16.msra.mxu2 %v2855_v29 }
 0x11c   : > { %1660 = vmatpush.bf16.msra.mxu0 %v2842_v26 }
 0x11d   : > { %v1287_v36 = vpop.f32.mrf.mxu0  ;;  %v1416_v47 = vmax.f32 %v1314_v42, 0.0  ;;  %v1327_v52 = vpop.f32.mrf.mxu3 }
 0x11e   : > { %v1288_v39 = vadd.f32 %v1287_v36, %v1274_v34  ;;  %v1328_v62 = vadd.f32 %v1327_v52, %v688_v57  ;;  %v2863_v52 = vld [vmem:[#allocation13 + $0x28] sm:$0xff] }
 0x11f   : > { %1741 = vmatpush.bf16.msra.mxu2 %v2854_v30 }
 0x120   : > { %v1301_v40 = vpop.f32.mrf.mxu1  ;;  %v1341_v55 = vpop.f32.mrf.mxu2 }
 0x121   : > { %v1302_v43 = vadd.f32 %v1301_v40, %v1288_v39  ;;  %v1342_v1 = vadd.f32 %v1341_v55, %v1328_v62 }
 0x123   : > { %v1316_v46 = vadd.f32 %v1315_v41, %v1302_v43  ;;  %1742 = vmatpush.bf16.msra.mxu2 %v2853_v45 }
 0x125   : > { %v1418_v49 = vmax.f32 %v1316_v46, 0.0  ;;  %v1329_v58 = vpop.f32.mrf.mxu3  ;;  %v2852_v46 = vld [vmem:[#allocation11 + $0x10] sm:$0xff] }
 0x126   : > { %v1330_v2 = vadd.f32 %v1329_v58, %v688_v57 }
 0x127   : > { %v1420_v51 = vpack.c.bf16 %v1418_v49, %v1416_v47  ;;  %1743 = vmatpush.bf16.msra.mxu2 %v2852_v46  ;;  %v2851_v47 = vld [vmem:[#allocation11 + $0x8] sm:$0xff]  ;;  %v2850_v49 = vld [vmem:[#allocation11] sm:$0xff] }
 0x128   : > { %v1343_v61 = vpop.f32.mrf.mxu2 }
 0x129   : > { %1562 = vmatmul.bf16.vlgmr.msrb.gmra.mxu1 %v1420_v51  ;;  %v1344_v7 = vadd.f32 %v1343_v61, %v1330_v2  ;;  %v2864_v51 = vld [vmem:[#allocation13 + $0x30] sm:$0xff] }
 0x12a   : > { %1824 = vmatpush.bf16.msra.mxu1 %v2864_v51  ;;  %v2860_v2 = vld [vmem:[#allocation13 + $0x10] sm:$0xff] }
 0x12b   : > { %1744 = vmatpush.bf16.msra.mxu2 %v2851_v47 }
 0x12e   : > { %1825 = vmatpush.bf16.msra.mxu1 %v2863_v52 }
 0x12f   : > { %1745 = vmatpush.bf16.msra.mxu2 %v2850_v49 }
 0x132   : > { %1826 = vmatpush.bf16.msra.mxu1 %v2862_v53 }
 0x135   : > { %v1355_v59 = vpop.f32.mrf.mxu0 }
 0x136   : > { %v1356_v8 = vadd.f32 %v1355_v59, %v1342_v1  ;;  %v2861_v1 = vld [vmem:[#allocation13 + $0x18] sm:$0xff] }
 0x137   : > { %1827 = vmatpush.bf16.msra.mxu1 %v2861_v1 }
 0x138   : > { %v1369_v0 = vpop.f32.mrf.mxu1 }
 0x139   : > { %v1370_v11 = vadd.f32 %v1369_v0, %v1356_v8  ;;  %v2871_v8 = vld [vmem:[#allocation14 + $0x28] sm:$0xff] }
 0x13b   : > { %1828 = vmatpush.bf16.msra.mxu1 %v2860_v2 }
 0x13d   : > { %v1383_v3 = vpop.f32.mrf.mxu3  ;;  %v1357_v5 = vpop.f32.mrf.mxu0 }
 0x13e   : > { %v1358_v9 = vadd.f32 %v1357_v5, %v1344_v7  ;;  %v1384_v54 = vadd.f32 %v1383_v3, %v1370_v11  ;;  %v2859_v3 = vld [vmem:[#allocation13 + $0x8] sm:$0xff]  ;;  %v2858_v5 = vld [vmem:[#allocation13] sm:$0xff]  ;;  %v2872_v7 = vld [vmem:[#allocation14 + $0x30] sm:$0xff] }
 0x13f   : > { %1829 = vmatpush.bf16.msra.mxu1 %v2859_v3  ;;  %v3005_v11 = vld [vmem:[%s3686_s8] ss:$0 sm:$0xff] }
 0x140   : > { %v1397_v6 = vpop.f32.mrf.mxu2  ;;  %v1371_v10 = vpop.f32.mrf.mxu1 }
 0x141   : > { %v1372_v37 = vadd.f32 %v1371_v10, %v1358_v9  ;;  %v1398_v44 = vadd.f32 %v1397_v6, %v1384_v54  ;;  %v2873_v6 = vld [vmem:[#allocation14 + $0x38] sm:$0xff]  ;;  %v2870_v9 = vld [vmem:[#allocation14 + $0x20] sm:$0xff] }
 0x142   : > { %1908 = vmatpush.bf16.msra.mxu3 %v2873_v6 }
 0x143   : > { %1830 = vmatpush.bf16.msra.mxu1 %v2858_v5 }
 0x145   : > { %v1385_v12 = vpop.f32.mrf.mxu3  ;;  %v1411_v13 = vpop.f32.mrf.mxu0 }
 0x146   : > { %v1386_v63 = vadd.f32 %v1385_v12, %v1372_v37  ;;  %v1412_v15 = vadd.f32 %v1411_v13, %v1398_v44  ;;  %1909 = vmatpush.bf16.msra.mxu3 %v2872_v7  ;;  %v2869_v44 = vld [vmem:[#allocation14 + $0x18] sm:$0xff] }
 0x148   : > { %v1399_v14 = vpop.f32.mrf.mxu2  ;;  %v1417_v18 = vmax.f32 %v1412_v15, 0.0  ;;  %v2868_v15 = vld [vmem:[#allocation14 + $0x10] sm:$0xff] }
 0x149   : > { %v1400_v16 = vadd.f32 %v1399_v14, %v1386_v63 }
 0x14a   : > { %1910 = vmatpush.bf16.msra.mxu3 %v2871_v8 }
 0x14d   : > { %v1413_v48 = vpop.f32.mrf.mxu0 }
 0x14e   : > { %v1414_v17 = vadd.f32 %v1413_v48, %v1400_v16  ;;  %1911 = vmatpush.bf16.msra.mxu3 %v2870_v9  ;;  %v2867_v16 = vld [vmem:[#allocation14 + $0x8] sm:$0xff]  ;;  %v2866_v48 = vld [vmem:[#allocation14] sm:$0xff] }
 0x150   : > { %v1419_v4 = vmax.f32 %v1414_v17, 0.0 }
 0x152   : > { %v1421_v60 = vpack.c.bf16 %v1419_v4, %v1417_v18  ;;  %1912 = vmatpush.bf16.msra.mxu3 %v2869_v44  ;;  %v3006_v18 = vld [vmem:[%s3688_s10] ss:$0 sm:$0xff] }
 0x154   : > { %1576 = vmatmul.bf16.vlgmr.msrb.gmra.mxu3 %v1421_v60 }
 0x156   : > { %1913 = vmatpush.bf16.msra.mxu3 %v2868_v15 }
 0x15a   : > { %1914 = vmatpush.bf16.msra.mxu3 %v2867_v16 }
 0x15e   : > { %1915 = vmatpush.bf16.msra.mxu3 %v2866_v48 }
 0x1a6   : > { %v1563_v31 = vpop.f32.mrf.mxu1 }
 0x1a7   : > { %v1564_v35 = vadd.f32 %v3003_v33, %v1563_v31 }
 0x1ae   : > { %v1565_v34 = vpop.f32.mrf.mxu1 }
 0x1af   : > { %v1566_v36 = vadd.f32 %v3003_v33, %v1565_v34 }
 0x1d7   : > { %v1577_v32 = vpop.f32.mrf.mxu3 }
 0x1d8   : > { %v1578_v38 = vadd.f32 %v1577_v32, %v1564_v35 }
 0x1da   : > { %v1582_v41 = vmax.f32 %v1578_v38, 0.0 }
 0x1df   : > { %v1579_v39 = vpop.f32.mrf.mxu3 }
 0x1e0   : > { %v1580_v40 = vadd.f32 %v1579_v39, %v1566_v36 }
 0x1e2   : > { %v1583_v42 = vmax.f32 %v1580_v40, 0.0 }
 0x1e4   : > { %v1584_v43 = vpack.c.bf16 %v1583_v42, %v1582_v41 }
 0x1e6   : > { %1661 = vmatmul.bf16.vlgmr.msra.gmra.mxu0 %v1584_v43 }
 0x263   : > { %v1662_v55 = vpop.f32.mrf.mxu0 }
 0x264   : > { %v1663_v57 = vadd.f32 %v3004_v56, %v1662_v55 }
 0x266   : > { %v1667_v61 = vmax.f32 %v1663_v57, 0.0 }
 0x26b   : > { %v1664_v58 = vpop.f32.mrf.mxu0 }
 0x26c   : > { %v1665_v59 = vadd.f32 %v3004_v56, %v1664_v58 }
 0x26e   : > { %v1668_v62 = vmax.f32 %v1665_v59, 0.0 }
 0x270   : > { %v1669_v0 = vpack.c.bf16 %v1668_v62, %v1667_v61 }
 0x272   : > { %1746 = vmatmul.bf16.vlgmr.msra.gmra.mxu2 %v1669_v0 }
 0x2f5   : > { %v1747_v10 = vpop.f32.mrf.mxu2 }
 0x2f6   : > { %v1748_v12 = vadd.f32 %v3005_v11, %v1747_v10 }
 0x2f8   : > { %v1752_v37 = vmax.f32 %v1748_v12, 0.0 }
 0x2fd   : > { %v1749_v13 = vpop.f32.mrf.mxu2 }
 0x2fe   : > { %v1750_v54 = vadd.f32 %v3005_v11, %v1749_v13 }
 0x300   : > { %v1753_v63 = vmax.f32 %v1750_v54, 0.0 }
 0x302   : > { %v1754_v14 = vpack.c.bf16 %v1753_v63, %v1752_v37 }
 0x304   : > { %1831 = vmatmul.bf16.vlgmr.msra.gmra.mxu1 %v1754_v14 }
 0x381   : > { %v1832_v17 = vpop.f32.mrf.mxu1 }
 0x382   : > { %v1833_v4 = vadd.f32 %v3006_v18, %v1832_v17 }
 0x384   : > { %v1837_v20 = vmax.f32 %v1833_v4, 0.0 }
 0x389   : > { %v1834_v60 = vpop.f32.mrf.mxu1 }
 0x38a   : > { %v1835_v19 = vadd.f32 %v3006_v18, %v1834_v60 }
 0x38c   : > { %v1838_v21 = vmax.f32 %v1835_v19, 0.0 }
 0x38e   : > { %v1839_v22 = vpack.c.bf16 %v1838_v21, %v1837_v20 }
 0x390   : > { %1916 = vmatmul.bf16.vlgmr.msra.gmra.mxu3 %v1839_v22 }
 0x413   : > { %v1917_v24 = vpop.f32.mrf.mxu3 }
 0x414   : > { %v1918_v25 = vadd.f32 %v3007_v23, %v1917_v24 }
 0x416   : > { %1922 = vst [vmem:[%s575_s2] sm:$0xff] %v1918_v25 }
 0x41b   : > { %v1919_v26 = vpop.f32.mrf.mxu3 }
 0x41c   : > { %v1920_v27 = vadd.f32 %v3007_v23, %v1919_v26 }
 0x41e   : > { %1923 = vst [vmem:[%s575_s2 + $0x8] sm:$0xff] %v1920_v27 }
 0x41f   : > { %3275 = shalt.err (!%p3272_p9)
}
 0x420   : > { %s3345_s9 = smov 128   ;;  %s3346_s29 = smov 8  }
 0x421   : > { %2908 = dma.vmem_to_hbm [thread:$0]  (%p3528_p0), %s1938_s16, 256, %s1940_s20, %s1925_s22, %s3345_s9, %s3345_s9, %s3346_s29  }
 0x422 PF: > { %s1954_s24 = sand.u32 1, %s3318_s25   ;;  %p3718_p10 = scmp.ge.s32.totalorder %s3330_s28, 2 }
 0x423   : > { %s1955_s19 = scalar_lea.sflag [#allocation4], %s1954_s24 }
 0x424   : > { %p2937_p11 = pnand %p3718_p10, %p3534_p6 }
 0x426   : > { %p2938_p12 = pneg %p2937_p11 }
 0x428   : > { %3313 = dma.done.wait (%p2938_p12), %s1955_s19, 256  }
 0x429   : > { %3315 = vsyncadd (%p2938_p12), %s1955_s19, 4294967040  ;;  %s3719_s18 = sld [smem:[#allocation23_spill]]  ;;  %p30_p2 = scmp.ge.s32.totalorder %s3508_s12, 4  }
 0x42a   : > { %s3720_s25 = smov %s3322_s26  ;;  %s3721_s26 = smov %s3326_s27 }
 0x42b   : > { %s3723_s28 = smov %s3508_s12  ;;  %32 = sbr.rel (!%p30_p2) target bundleno = 19 (0x13), region = 145 }
 0x42f   : > { %s3722_s27 = smov %s3719_s18 }
 0x430   :  { %1961 = vsyncpa [#allocation3], 1 }
 0x431   :  { %1963 = vsyncpa [#allocation3 + $0x1], 1 }
 0x432   :  { %1964 = vsyncpa [#allocation6], 1 }
 0x433   :  { %1965 = vsyncpa [#allocation9], 1 }
 0x434   :  { %1966 = vsyncpa [#allocation12], 1 }
 0x435   :  { %1967 = vsyncpa [#allocation15], 1 }
 0x436   :  { %1968 = vsyncpa [#allocation4], 1 }
 0x437   :  { %1970 = vsyncpa [#allocation4 + $0x1], 1 }

</bundles_post_ra>
